<compile_context>
chip_gen: v6e
topology: v6e:2x2x1
jax: 0.10.0
libtpu: 0.0.40
codegen_flags: <defaults>
</compile_context>

<pallas_src>
import jax
import jax.numpy as jnp
from jax.experimental import pallas as pl
from jax.experimental.pallas import tpu as pltpu

IN_FEATURES = 42
OUT_FEATURES = 7
HIDDEN = (512, 1024, 512)


def _round_up(n, m):
    return ((n + m - 1) // m) * m


def _mlp_kernel(x_ref,
                w1_ref, b1_ref,
                w2_ref, b2_ref,
                w3_ref, b3_ref,
                w4_ref, b4_ref,
                o_ref):
    # All matmuls: bf16 x bf16 on the MXU with f32 accumulation; ReLU on the VPU.
    x = x_ref[...].astype(jnp.bfloat16)
    h = jnp.dot(x, w1_ref[...], preferred_element_type=jnp.float32)
    h = jnp.maximum(h + b1_ref[...], 0.0)
    h = jnp.dot(h.astype(jnp.bfloat16), w2_ref[...], preferred_element_type=jnp.float32)
    h = jnp.maximum(h + b2_ref[...], 0.0)
    h = jnp.dot(h.astype(jnp.bfloat16), w3_ref[...], preferred_element_type=jnp.float32)
    h = jnp.maximum(h + b3_ref[...], 0.0)
    h = jnp.dot(h.astype(jnp.bfloat16), w4_ref[...], preferred_element_type=jnp.float32)
    o_ref[...] = (h + b4_ref[...]).astype(o_ref.dtype)


def prepare_params(params):
    """Cast weights to bf16 (streamed once, VMEM-resident) and biases to f32.

    Note: bf16 weights/activations deviate slightly from the f32 PyTorch model;
    the MXU still accumulates in f32, so the error stays at the bf16-rounding
    level (~1e-3 for this network's activation scale).
    """
    return tuple((w.astype(jnp.bfloat16), b.astype(jnp.float32)) for (w, b) in params)


def ki_forward(x, prepared):
    """Pallas implementation of Ki.forward (4-layer MLP, fused in one kernel)."""
    (w1, b1), (w2, b2), (w3, b3), (w4, b4) = prepared
    B, F = x.shape
    h1, h2, h3 = HIDDEN

    # Batch tiling:
    #   * B <= 32        : one tile, rounded to 16 rows (bf16 (16,128) packing)
    #   * 32 < B <= 1024 : exactly two tiles -> both v7x TensorCores busy
    #   * B > 1024       : 512-row tiles (amortize per-grid-step overhead)
    if B <= 32:
        TB = _round_up(B, 16)
    elif B <= 1024:
        TB = min(512, _round_up((B + 1) // 2, 16))
    else:
        TB = 512
    n_tiles = pl.cdiv(B, TB)
    B_grid = n_tiles * TB

    # Row-only pad (no lane pad, no dtype cast): zero extra HBM pass when B
    # divides TB, and only a tiny copy otherwise.  Padded rows produce garbage
    # outputs that are sliced off below.
    xin = x if B_grid == B else jnp.pad(x, ((0, B_grid - B), (0, 0)))

    flops = 2 * B_grid * (F * h1 + h1 * h2 + h2 * h3 + h3 * OUT_FEATURES)
    bytes_accessed = (
        B_grid * F * 4                                        # f32 input
        + (w1.size + w2.size + w3.size + w4.size) * 2         # bf16 weights (loaded once)
        + (b1.size + b2.size + b3.size + b4.size) * 4         # f32 biases
        + B_grid * OUT_FEATURES * 4                           # f32 output (narrow)
    )

    const = lambda i: (0, 0)   # weights/biases: same block every step -> VMEM resident

    out = pl.pallas_call(
        _mlp_kernel,
        out_shape=jax.ShapeDtypeStruct((B_grid, OUT_FEATURES), jnp.float32),
        grid=(n_tiles,),
        in_specs=[
            pl.BlockSpec((TB, F), lambda i: (i, 0)),           # x tile, f32, unpadded lanes
            pl.BlockSpec((F, h1), const),  pl.BlockSpec((1, h1), const),
            pl.BlockSpec((h1, h2), const), pl.BlockSpec((1, h2), const),
            pl.BlockSpec((h2, h3), const), pl.BlockSpec((1, h3), const),
            pl.BlockSpec((h3, OUT_FEATURES), const), pl.BlockSpec((1, OUT_FEATURES), const),
        ],
        out_specs=pl.BlockSpec((TB, OUT_FEATURES), lambda i: (i, 0)),
        compiler_params=pltpu.CompilerParams(
            dimension_semantics=("parallel",),
            vmem_limit_bytes=48 * 1024 * 1024),
        cost_estimate=pl.CostEstimate(
            flops=flops, transcendentals=0, bytes_accessed=bytes_accessed),
    )(xin, w1, b1, w2, b2, w3, b3, w4, b4)

    return out[:B] if B_grid != B else out


def init_params(key):
    """Deterministic init matching nn.Linear shapes (stored transposed, f32)."""
    sizes = [(IN_FEATURES, 512), (512, 1024), (1024, 512), (512, OUT_FEATURES)]
    params = []
    for i, (fan_in, fan_out) in enumerate(sizes):
        k_w, k_b, key = jax.random.split(jax.random.fold_in(key, i), 3)
        bound = 1.0 / (fan_in ** 0.5)   # PyTorch default uniform(-1/sqrt(fan_in), ...)
        w = jax.random.uniform(k_w, (fan_in, fan_out), jnp.float32, -bound, bound)
        b = jax.random.uniform(k_b, (1, fan_out), jnp.float32, -bound, bound)
        params.append((w, b))
    return params


def reference_forward(x, params):
    """Plain-JAX reference using the same bf16-weight / f32-accumulate recipe."""
    h = x
    for i, (w, b) in enumerate(params):
        h = jnp.dot(h.astype(jnp.bfloat16), w.astype(jnp.bfloat16),
                    preferred_element_type=jnp.float32) + b
        if i < len(params) - 1:
            h = jnp.maximum(h, 0.0)
    return h


# TODO(synk): training utilities (AdamW/MSELoss), model save/load, and the
# game-board helper methods of Ki (flatten_game, model_move, random_move, ...)
# are host-side Python/IO logic with no Pallas equivalent; only forward() is
# implemented.

if __name__ == "__main__":
    key = jax.random.PRNGKey(0)
    k_x, k_p = jax.random.split(key)

    batch = 8
    x = jax.random.normal(k_x, (batch, IN_FEATURES), jnp.float32)
    params = init_params(k_p)
    prepared = prepare_params(params)

    fwd = jax.jit(ki_forward)
    out = jax.block_until_ready(fwd(x, prepared))

    ref = jax.block_until_ready(reference_forward(x, params))
    assert out.shape == (batch, OUT_FEATURES)
    assert jnp.allclose(out, ref, atol=1e-2, rtol=1e-2), \
        float(jnp.max(jnp.abs(out - ref)))

    print("KERNEL_OK")
</pallas_src>

<mosaic_0001>
module attributes {stable_mosaic.version = 11 : i64} {
  func.func @_mlp_kernel(%arg0: i32, %arg1: memref<16x42xf32, #tpu.memory_space<vmem>>, %arg2: memref<42x512xbf16, #tpu.memory_space<vmem>>, %arg3: memref<1x512xf32, #tpu.memory_space<vmem>>, %arg4: memref<512x1024xbf16, #tpu.memory_space<vmem>>, %arg5: memref<1x1024xf32, #tpu.memory_space<vmem>>, %arg6: memref<1024x512xbf16, #tpu.memory_space<vmem>>, %arg7: memref<1x512xf32, #tpu.memory_space<vmem>>, %arg8: memref<512x7xbf16, #tpu.memory_space<vmem>>, %arg9: memref<1x7xf32, #tpu.memory_space<vmem>>, %arg10: memref<16x7xf32, #tpu.memory_space<vmem>>) attributes {dimension_semantics = [#tpu.dimension_semantics<parallel>], iteration_bounds = array<i64: 1>, scalar_prefetch = 0 : i64, scratch_operands = 0 : i64, tpu.core_type = #tpu.core_type<tc>, window_params = [{transform_indices = @transform_0, window_bounds = array<i64: 16, 42>}, {pipeline_mode = #tpu.pipeline_mode<synchronous>, transform_indices = @transform_1, window_bounds = array<i64: 42, 512>}, {pipeline_mode = #tpu.pipeline_mode<synchronous>, transform_indices = @transform_2, window_bounds = array<i64: 1, 512>}, {pipeline_mode = #tpu.pipeline_mode<synchronous>, transform_indices = @transform_3, window_bounds = array<i64: 512, 1024>}, {pipeline_mode = #tpu.pipeline_mode<synchronous>, transform_indices = @transform_4, window_bounds = array<i64: 1, 1024>}, {pipeline_mode = #tpu.pipeline_mode<synchronous>, transform_indices = @transform_5, window_bounds = array<i64: 1024, 512>}, {pipeline_mode = #tpu.pipeline_mode<synchronous>, transform_indices = @transform_6, window_bounds = array<i64: 1, 512>}, {pipeline_mode = #tpu.pipeline_mode<synchronous>, transform_indices = @transform_7, window_bounds = array<i64: 512, 7>}, {pipeline_mode = #tpu.pipeline_mode<synchronous>, transform_indices = @transform_8, window_bounds = array<i64: 1, 7>}, {transform_indices = @transform_9, window_bounds = array<i64: 16, 7>}]} {
    %c0 = arith.constant 0 : index
    %c0_0 = arith.constant 0 : index
    %0 = vector.load %arg1[%c0, %c0_0] : memref<16x42xf32, #tpu.memory_space<vmem>>, vector<16x42xf32>
    %1 = arith.truncf %0 : vector<16x42xf32> to vector<16x42xbf16>
    %c0_1 = arith.constant 0 : index
    %c0_2 = arith.constant 0 : index
    %2 = vector.load %arg2[%c0_1, %c0_2] : memref<42x512xbf16, #tpu.memory_space<vmem>>, vector<42x512xbf16>
    %cst = arith.constant dense<0.000000e+00> : vector<16x512xf32>
    %3 = tpu.matmul %1, %2, %cst {dimension_numbers = #tpu.dot_dimension_numbers<[1], [0], [0], [1], [0, 0, 1, 1], [], []>} : vector<16x42xbf16>, vector<42x512xbf16>, vector<16x512xf32> -> vector<16x512xf32>
    %c0_3 = arith.constant 0 : index
    %c0_4 = arith.constant 0 : index
    %4 = vector.load %arg3[%c0_3, %c0_4] : memref<1x512xf32, #tpu.memory_space<vmem>>, vector<1x512xf32>
    %5 = vector.broadcast %4 : vector<1x512xf32> to vector<16x512xf32>
    %6 = arith.addf %3, %5 : vector<16x512xf32>
    %cst_5 = arith.constant 0.000000e+00 : f32
    %7 = vector.broadcast %cst_5 : f32 to vector<16x512xf32>
    %8 = arith.maximumf %6, %7 : vector<16x512xf32>
    %9 = arith.truncf %8 : vector<16x512xf32> to vector<16x512xbf16>
    %c0_6 = arith.constant 0 : index
    %c0_7 = arith.constant 0 : index
    %10 = vector.load %arg4[%c0_6, %c0_7] : memref<512x1024xbf16, #tpu.memory_space<vmem>>, vector<512x1024xbf16>
    %cst_8 = arith.constant dense<0.000000e+00> : vector<16x1024xf32>
    %11 = tpu.matmul %9, %10, %cst_8 {dimension_numbers = #tpu.dot_dimension_numbers<[1], [0], [0], [1], [0, 0, 1, 1], [], []>} : vector<16x512xbf16>, vector<512x1024xbf16>, vector<16x1024xf32> -> vector<16x1024xf32>
    %c0_9 = arith.constant 0 : index
    %c0_10 = arith.constant 0 : index
    %12 = vector.load %arg5[%c0_9, %c0_10] : memref<1x1024xf32, #tpu.memory_space<vmem>>, vector<1x1024xf32>
    %13 = vector.broadcast %12 : vector<1x1024xf32> to vector<16x1024xf32>
    %14 = arith.addf %11, %13 : vector<16x1024xf32>
    %cst_11 = arith.constant 0.000000e+00 : f32
    %15 = vector.broadcast %cst_11 : f32 to vector<16x1024xf32>
    %16 = arith.maximumf %14, %15 : vector<16x1024xf32>
    %17 = arith.truncf %16 : vector<16x1024xf32> to vector<16x1024xbf16>
    %c0_12 = arith.constant 0 : index
    %c0_13 = arith.constant 0 : index
    %18 = vector.load %arg6[%c0_12, %c0_13] : memref<1024x512xbf16, #tpu.memory_space<vmem>>, vector<1024x512xbf16>
    %cst_14 = arith.constant dense<0.000000e+00> : vector<16x512xf32>
    %19 = tpu.matmul %17, %18, %cst_14 {dimension_numbers = #tpu.dot_dimension_numbers<[1], [0], [0], [1], [0, 0, 1, 1], [], []>} : vector<16x1024xbf16>, vector<1024x512xbf16>, vector<16x512xf32> -> vector<16x512xf32>
    %c0_15 = arith.constant 0 : index
    %c0_16 = arith.constant 0 : index
    %20 = vector.load %arg7[%c0_15, %c0_16] : memref<1x512xf32, #tpu.memory_space<vmem>>, vector<1x512xf32>
    %21 = vector.broadcast %20 : vector<1x512xf32> to vector<16x512xf32>
    %22 = arith.addf %19, %21 : vector<16x512xf32>
    %cst_17 = arith.constant 0.000000e+00 : f32
    %23 = vector.broadcast %cst_17 : f32 to vector<16x512xf32>
    %24 = arith.maximumf %22, %23 : vector<16x512xf32>
    %25 = arith.truncf %24 : vector<16x512xf32> to vector<16x512xbf16>
    %c0_18 = arith.constant 0 : index
    %c0_19 = arith.constant 0 : index
    %26 = vector.load %arg8[%c0_18, %c0_19] : memref<512x7xbf16, #tpu.memory_space<vmem>>, vector<512x7xbf16>
    %cst_20 = arith.constant dense<0.000000e+00> : vector<16x7xf32>
    %27 = tpu.matmul %25, %26, %cst_20 {dimension_numbers = #tpu.dot_dimension_numbers<[1], [0], [0], [1], [0, 0, 1, 1], [], []>} : vector<16x512xbf16>, vector<512x7xbf16>, vector<16x7xf32> -> vector<16x7xf32>
    %c0_21 = arith.constant 0 : index
    %c0_22 = arith.constant 0 : index
    %28 = vector.load %arg9[%c0_21, %c0_22] : memref<1x7xf32, #tpu.memory_space<vmem>>, vector<1x7xf32>
    %29 = vector.broadcast %28 : vector<1x7xf32> to vector<16x7xf32>
    %30 = arith.addf %27, %29 : vector<16x7xf32>
    %c0_23 = arith.constant 0 : index
    %c0_24 = arith.constant 0 : index
    %31 = vector.load %arg10[%c0_23, %c0_24] : memref<16x7xf32, #tpu.memory_space<vmem>>, vector<16x7xf32>
    tpu.vector_store %arg10[%c0_23, %c0_24], %30 {strides = array<i32>} : memref<16x7xf32, #tpu.memory_space<vmem>>, vector<16x7xf32>,
    return
  }
  func.func @transform_0(%arg0: i32) -> (i32, i32) {
    %c0_i32 = arith.constant 0 : i32
    %c0_i32_0 = arith.constant 0 : i32
    return %arg0, %c0_i32 : i32, i32
  }
  func.func @transform_1(%arg0: i32) -> (i32, i32) {
    %c0_i32 = arith.constant 0 : i32
    %c0_i32_0 = arith.constant 0 : i32
    %c0_i32_1 = arith.constant 0 : i32
    return %c0_i32, %c0_i32_0 : i32, i32
  }
  func.func @transform_2(%arg0: i32) -> (i32, i32) {
    %c0_i32 = arith.constant 0 : i32
    %c0_i32_0 = arith.constant 0 : i32
    %c0_i32_1 = arith.constant 0 : i32
    return %c0_i32, %c0_i32_0 : i32, i32
  }
  func.func @transform_3(%arg0: i32) -> (i32, i32) {
    %c0_i32 = arith.constant 0 : i32
    %c0_i32_0 = arith.constant 0 : i32
    %c0_i32_1 = arith.constant 0 : i32
    return %c0_i32, %c0_i32_0 : i32, i32
  }
  func.func @transform_4(%arg0: i32) -> (i32, i32) {
    %c0_i32 = arith.constant 0 : i32
    %c0_i32_0 = arith.constant 0 : i32
    %c0_i32_1 = arith.constant 0 : i32
    return %c0_i32, %c0_i32_0 : i32, i32
  }
  func.func @transform_5(%arg0: i32) -> (i32, i32) {
    %c0_i32 = arith.constant 0 : i32
    %c0_i32_0 = arith.constant 0 : i32
    %c0_i32_1 = arith.constant 0 : i32
    return %c0_i32, %c0_i32_0 : i32, i32
  }
  func.func @transform_6(%arg0: i32) -> (i32, i32) {
    %c0_i32 = arith.constant 0 : i32
    %c0_i32_0 = arith.constant 0 : i32
    %c0_i32_1 = arith.constant 0 : i32
    return %c0_i32, %c0_i32_0 : i32, i32
  }
  func.func @transform_7(%arg0: i32) -> (i32, i32) {
    %c0_i32 = arith.constant 0 : i32
    %c0_i32_0 = arith.constant 0 : i32
    %c0_i32_1 = arith.constant 0 : i32
    return %c0_i32, %c0_i32_0 : i32, i32
  }
  func.func @transform_8(%arg0: i32) -> (i32, i32) {
    %c0_i32 = arith.constant 0 : i32
    %c0_i32_0 = arith.constant 0 : i32
    %c0_i32_1 = arith.constant 0 : i32
    return %c0_i32, %c0_i32_0 : i32, i32
  }
  func.func @transform_9(%arg0: i32) -> (i32, i32) {
    %c0_i32 = arith.constant 0 : i32
    %c0_i32_0 = arith.constant 0 : i32
    return %arg0, %c0_i32 : i32, i32
  }
}

</mosaic_0001>

<bundles_post_ra>
// kernel: ki_forward.1
= control target key start
LH: loop header
LB: loop body
LE: loop exit
PB: predicated region body
PF: predicated region fallthrough
CT: control target
= control target key end

     0   :  { %14 = vsyncpa [#allocation3], 0  ;;  %s5912_s0 = inlined_call_operand.vmem [shape: f32[16,42], index: 0, kind: input, shape index: {}]   ;;  %s5913_s1 = inlined_call_operand.vmem [shape: bf16[42,512], index: 1, kind: input, shape index: {}]   ;;  %s5914_s2 = inlined_call_operand.vmem [shape: f32[1,512], index: 2, kind: input, shape index: {}]   ;;  %s5915_s3 = inlined_call_operand.hbm [shape: bf16[512,1024], index: 3, kind: input, shape index: {}]   ;;  %s5916_s4 = inlined_call_operand.vmem [shape: f32[1,1024], index: 4, kind: input, shape index: {}]   ;;  %s5917_s5 = inlined_call_operand.hbm [shape: bf16[1024,512], index: 5, kind: input, shape index: {}]   ;;  %s5918_s6 = inlined_call_operand.vmem [shape: f32[1,512], index: 6, kind: input, shape index: {}]   ;;  %s5919_s7 = inlined_call_operand.vmem [shape: bf16[512,7], index: 7, kind: input, shape index: {}]   ;;  %s5920_s8 = inlined_call_operand.vmem [shape: f32[1,7], index: 8, kind: input, shape index: {}]   ;;  %s5921_s9 = inlined_call_operand.vmem [shape: f32[16,7], index: 9, kind: output, shape index: {}]  }
   0x1   :  { %15 = vsyncpa [#allocation5], 0  ;;  %s5573_s30 = smov [#allocation2]  }
   0x2   :  { %s27_s10 = sshll.u32 %s5573_s30, 4  ;;  %s28_s10 = int_to_ptr.vmem [resolvable:$true] %s27_s10 }
   0x3   :  { %s5537_s11 = scalar_lea.vmem %s28_s10, 32768  ;;  %p5542_p1 = scmp.lt.s32.totalorder %s28_s10, %s28_s10 }
   0x4   :  { %p5538_p0 = scmp.ne.s32.totalorder %s28_s10, %s5537_s11  ;;  %p5543_p2 = scmp.lt.s32.totalorder %s5537_s11, %s5537_s11 }
   0x6   :  { %p5544_p3 = por %p5543_p2, %p5542_p1 }
   0x8   :  { %p5545_p4 = pnand %p5544_p3, %p5538_p0 }
   0xa   :  { %5548 = shalt.err (!%p5545_p4)
}
   0xb   :  { %s5574_s12 = smov 512   ;;  %s5575_s13 = smov 32  }
   0xc   :  { %33 = dma.hbm_to_vmem [thread:$0]  %s5915_s3, 32768, %s28_s10, [#allocation3], %s5574_s12, %s5574_s12, %s5575_s13  }
   0xd   :  { %s5576_s16 = smov [#allocation4]  }
   0xe   :  { %s41_s17 = sshll.u32 %s5576_s16, 4  ;;  %s42_s17 = int_to_ptr.vmem [resolvable:$true] %s41_s17 }
   0xf   :  { %s5557_s18 = scalar_lea.vmem %s42_s17, 32768  ;;  %p5562_p6 = scmp.lt.s32.totalorder %s42_s17, %s42_s17 }
  0x10   :  { %p5558_p5 = scmp.ne.s32.totalorder %s42_s17, %s5557_s18  ;;  %p5563_p7 = scmp.lt.s32.totalorder %s5557_s18, %s5557_s18 }
  0x12   :  { %p5564_p8 = por %p5563_p7, %p5562_p6 }
  0x14   :  { %p5565_p9 = pnand %p5564_p8, %p5558_p5 }
  0x16   :  { %5568 = shalt.err (!%p5565_p9)
}
  0x17   :  { %s5577_s19 = smov 256   ;;  %s5578_s20 = smov 16  }
  0x18   :  { %47 = dma.hbm_to_vmem [thread:$0]  %s5917_s5, 32768, %s42_s17, [#allocation5], %s5577_s19, %s5577_s19, %s5578_s20  }
  0x19   :  { %5569 = dma.done.wait [#allocation3], 32768  }
  0x1a   :  { %5570 = vsyncadd [#allocation3], 4294934528 }
  0x1b   :  { %5571 = dma.done.wait [#allocation5], 32768  }
  0x1c   :  { %5572 = vsyncadd [#allocation5], 4294934528  ;;  %v5579_v0 = vmov 0   ;;  %vm158_vm0 = vcmask 1044480   ;;  %v5101_v5 = vld [vmem:[%s5913_s1 + $0x24] ss:$16 sps:$4 sm:$0xff]  }
  0x1d   :  { %203 = vmatprep.mubr.bf16.mxu0 %v5579_v0  ;;  %246 = vmatprep.mubr.bf16.mxu1 %v5579_v0  ;;  %v5095_v1 = vld [vmem:[%s5913_s1 + $0x44] ss:$16 sps:$4 sm:$0x1f]   ;;  %v5097_v2 = vld [vmem:[%s5913_s1 + $0x4c] ss:$16 sps:$4 sm:$0x1f]  }
  0x1e   :  { %4495 = vmatprep.subr.msk.bf16.mxu0 %vm158_vm0, %v5095_v1  ;;  %v5099_v3 = vld [vmem:[%s5913_s1 + $0x40] ss:$16 sps:$4 sm:$0x1f]   ;;  %v5100_v4 = vld [vmem:[%s5913_s1 + $0x48] ss:$16 sps:$4 sm:$0x1f]   ;;  %4497 = vmatprep.subr.msk.bf16.mxu1 %vm158_vm0, %v5097_v2 }
  0x1f   :  { %v160_v6 = vsel %vm158_vm0, %v5099_v3, 0  ;;  %v166_v7 = vsel %vm158_vm0, %v5100_v4, 0  ;;  %v5103_v8 = vld [vmem:[%s5913_s1 + $0x2c] ss:$16 sps:$4 sm:$0xff]   ;;  %v5105_v9 = vld [vmem:[%s5913_s1 + $0x20] ss:$16 sps:$4 sm:$0xff]  }
  0x20   :  { %182 = vmatpush1.bf16.msra.mxu0 %v160_v6  ;;  %225 = vmatpush1.bf16.msra.mxu1 %v166_v7  ;;  %v5106_v10 = vld [vmem:[%s5913_s1 + $0x28] ss:$16 sps:$4 sm:$0xff]   ;;  %v5107_v11 = vld [vmem:[%s5913_s1 + $0x4] ss:$16 sps:$4 sm:$0xff]   ;;  %v5109_v12 = vld [vmem:[%s5913_s1 + $0xc] ss:$16 sps:$4 sm:$0xff]  }
  0x21   :  { %183 = vmatprep.subr.bf16.mxu0 %v5101_v5  ;;  %226 = vmatprep.subr.bf16.mxu1 %v5103_v8  ;;  %v5111_v13 = vld [vmem:[%s5913_s1] ss:$16 sps:$4 sm:$0xff]   ;;  %v5112_v14 = vld [vmem:[%s5913_s1 + $0x8] ss:$16 sps:$4 sm:$0xff]   ;;  %vm154_vm1 = vcmask 343040   ;;  %vm4474_vm2 = vcmask 56320  }
  0x22   :  { %v61_v15 = vld [vmem:[%s5912_s0] sm:$0xff]  ;;  %v62_v16 = vld [vmem:[%s5912_s0 + $0x8] sm:$0xff] }
  0x23   :  { %v325_v17 = vld [vmem:[#allocation2 + $0x1c0] sm:$0xff]  ;;  %v63_v27 = vpack.c.bf16 %v62_v16, %v61_v15 }
  0x24   :  { %184 = vmatpush1.bf16.msra.mxu0 %v5105_v9  ;;  %227 = vmatpush1.bf16.msra.mxu1 %v5106_v10  ;;  %v329_v18 = vld [vmem:[#allocation2 + $0x1e0] sm:$0xff] }
  0x25   :  { %v453_v19 = vld [vmem:[#allocation2 + $0x5c0] sm:$0xff]  ;;  %185 = vmatprep.subr.bf16.mxu0 %v5107_v11  ;;  %228 = vmatprep.subr.bf16.mxu1 %v5109_v12  ;;  %v4556_v20 = vcombine.high %v325_v17, %v329_v18  ;;  %v4555_v28 = vcombine.low %v325_v17, %v329_v18 }
  0x26   :  { %v457_v21 = vld [vmem:[#allocation2 + $0x5e0] sm:$0xff] }
  0x27   :  { %v317_v22 = vld [vmem:[#allocation2 + $0x180] sm:$0xff]  ;;  %v4684_v23 = vcombine.high %v453_v19, %v457_v21  ;;  %v4683_v29 = vcombine.low %v453_v19, %v457_v21 }
  0x28   :  { %v321_v24 = vld [vmem:[#allocation2 + $0x1a0] sm:$0xff]  ;;  %186 = vmatpush1.bf16.msra.mxu0 %v5111_v13  ;;  %229 = vmatpush1.bf16.msra.mxu1 %v5112_v14 }
  0x29   :  { %v445_v25 = vld [vmem:[#allocation2 + $0x580] sm:$0xff]  ;;  %1847 = vmatprep.subr.bf16.mxu0 %v4556_v20  ;;  %1890 = vmatprep.subr.bf16.mxu1 %v4684_v23  ;;  %v4548_v30 = vcombine.high %v317_v22, %v321_v24  ;;  %v4547_v36 = vcombine.low %v317_v22, %v321_v24 }
  0x2a   :  { %v449_v26 = vld [vmem:[#allocation2 + $0x5a0] sm:$0xff] }
  0x2b   :  { %v4676_v31 = vcombine.high %v445_v25, %v449_v26  ;;  %v309_v32 = vld [vmem:[#allocation2 + $0x140] sm:$0xff]  ;;  %4496 = vmatmul.mubr.msk.bf16.vlgmr.msra.gmra.mxu0 %vm154_vm1, %v63_v27  ;;  %4498 = vmatmul.mubr.msk.bf16.vlgmr.msra.gmra.mxu1 %vm154_vm1, %v63_v27  ;;  %v4675_v37 = vcombine.low %v445_v25, %v449_v26 }
  0x2c   :  { %v313_v33 = vld [vmem:[#allocation2 + $0x160] sm:$0xff]  ;;  %1848 = vmatpush1.bf16.msra.mxu0 %v4555_v28  ;;  %1891 = vmatpush1.bf16.msra.mxu1 %v4683_v29 }
  0x2d   :  { %v437_v34 = vld [vmem:[#allocation2 + $0x540] sm:$0xff]  ;;  %1849 = vmatprep.subr.bf16.mxu0 %v4548_v30  ;;  %1892 = vmatprep.subr.bf16.mxu1 %v4676_v31  ;;  %v4540_v38 = vcombine.high %v309_v32, %v313_v33  ;;  %v4539_v44 = vcombine.low %v309_v32, %v313_v33 }
  0x2e   :  { %v441_v35 = vld [vmem:[#allocation2 + $0x560] sm:$0xff] }
  0x2f   :  { %v4668_v39 = vcombine.high %v437_v34, %v441_v35  ;;  %v301_v40 = vld [vmem:[#allocation2 + $0x100] sm:$0xff]  ;;  %v4667_v45 = vcombine.low %v437_v34, %v441_v35 }
  0x30   :  { %v305_v41 = vld [vmem:[#allocation2 + $0x120] sm:$0xff]  ;;  %1850 = vmatpush1.bf16.msra.mxu0 %v4547_v36  ;;  %1893 = vmatpush1.bf16.msra.mxu1 %v4675_v37 }
  0x31   :  { %v429_v42 = vld [vmem:[#allocation2 + $0x500] sm:$0xff]  ;;  %1851 = vmatprep.subr.bf16.mxu0 %v4540_v38  ;;  %1894 = vmatprep.subr.bf16.mxu1 %v4668_v39  ;;  %v4532_v46 = vcombine.high %v301_v40, %v305_v41  ;;  %v4531_v52 = vcombine.low %v301_v40, %v305_v41 }
  0x32   :  { %v433_v43 = vld [vmem:[#allocation2 + $0x520] sm:$0xff] }
  0x33   :  { %v4660_v47 = vcombine.high %v429_v42, %v433_v43  ;;  %v293_v48 = vld [vmem:[#allocation2 + $0xc0] sm:$0xff]  ;;  %v4659_v53 = vcombine.low %v429_v42, %v433_v43 }
  0x34   :  { %v297_v49 = vld [vmem:[#allocation2 + $0xe0] sm:$0xff]  ;;  %1852 = vmatpush1.bf16.msra.mxu0 %v4539_v44  ;;  %1895 = vmatpush1.bf16.msra.mxu1 %v4667_v45 }
  0x35   :  { %v421_v50 = vld [vmem:[#allocation2 + $0x4c0] sm:$0xff]  ;;  %1853 = vmatprep.subr.bf16.mxu0 %v4532_v46  ;;  %1896 = vmatprep.subr.bf16.mxu1 %v4660_v47  ;;  %v4524_v56 = vcombine.high %v293_v48, %v297_v49  ;;  %v4523_v60 = vcombine.low %v293_v48, %v297_v49 }
  0x36   :  { %v425_v51 = vld [vmem:[#allocation2 + $0x4e0] sm:$0xff] }
  0x37   :  { %v285_v54 = vld [vmem:[#allocation2 + $0x80] sm:$0xff]  ;;  %v4652_v57 = vcombine.high %v421_v50, %v425_v51  ;;  %v4651_v61 = vcombine.low %v421_v50, %v425_v51 }
  0x38   :  { %v289_v55 = vld [vmem:[#allocation2 + $0xa0] sm:$0xff]  ;;  %1854 = vmatpush1.bf16.msra.mxu0 %v4531_v52  ;;  %1897 = vmatpush1.bf16.msra.mxu1 %v4659_v53 }
  0x39   :  { %v413_v58 = vld [vmem:[#allocation2 + $0x480] sm:$0xff]  ;;  %1855 = vmatprep.subr.bf16.mxu0 %v4524_v56  ;;  %1898 = vmatprep.subr.bf16.mxu1 %v4652_v57  ;;  %v4516_v2 = vcombine.high %v285_v54, %v289_v55  ;;  %v4515_v4 = vcombine.low %v285_v54, %v289_v55 }
  0x3a   :  { %v417_v59 = vld [vmem:[#allocation2 + $0x4a0] sm:$0xff] }
  0x3b   :  { %v277_v62 = vld [vmem:[#allocation2 + $0x40] sm:$0xff]  ;;  %v4644_v3 = vcombine.high %v413_v58, %v417_v59  ;;  %v4643_v5 = vcombine.low %v413_v58, %v417_v59 }
  0x3c   :  { %v281_v63 = vld [vmem:[#allocation2 + $0x60] sm:$0xff]  ;;  %1856 = vmatpush1.bf16.msra.mxu0 %v4523_v60  ;;  %1899 = vmatpush1.bf16.msra.mxu1 %v4651_v61 }
  0x3d   :  { %v405_v0 = vld [vmem:[#allocation2 + $0x440] sm:$0xff]  ;;  %1857 = vmatprep.subr.bf16.mxu0 %v4516_v2  ;;  %1900 = vmatprep.subr.bf16.mxu1 %v4644_v3  ;;  %v4508_v10 = vcombine.high %v277_v62, %v281_v63  ;;  %v4507_v12 = vcombine.low %v277_v62, %v281_v63 }
  0x3e   :  { %v409_v1 = vld [vmem:[#allocation2 + $0x460] sm:$0xff] }
  0x3f   :  { %v269_v6 = vld [vmem:[#allocation2] sm:$0xff]  ;;  %v4636_v11 = vcombine.high %v405_v0, %v409_v1  ;;  %v4635_v13 = vcombine.low %v405_v0, %v409_v1 }
  0x40   :  { %v273_v7 = vld [vmem:[#allocation2 + $0x20] sm:$0xff]  ;;  %1858 = vmatpush1.bf16.msra.mxu0 %v4515_v4  ;;  %1901 = vmatpush1.bf16.msra.mxu1 %v4643_v5 }
  0x41   :  { %v397_v8 = vld [vmem:[#allocation2 + $0x400] sm:$0xff]  ;;  %1859 = vmatprep.subr.bf16.mxu0 %v4508_v10  ;;  %1902 = vmatprep.subr.bf16.mxu1 %v4636_v11  ;;  %v4500_v18 = vcombine.high %v269_v6, %v273_v7  ;;  %v4499_v20 = vcombine.low %v269_v6, %v273_v7 }
  0x42   :  { %v401_v9 = vld [vmem:[#allocation2 + $0x420] sm:$0xff] }
  0x43   :  { %v389_v14 = vld [vmem:[#allocation2 + $0x3c0] sm:$0xff]  ;;  %v4628_v19 = vcombine.high %v397_v8, %v401_v9  ;;  %v4627_v21 = vcombine.low %v397_v8, %v401_v9 }
  0x44   :  { %v393_v15 = vld [vmem:[#allocation2 + $0x3e0] sm:$0xff]  ;;  %1860 = vmatpush1.bf16.msra.mxu0 %v4507_v12  ;;  %1903 = vmatpush1.bf16.msra.mxu1 %v4635_v13 }
  0x45   :  { %v517_v16 = vld [vmem:[#allocation2 + $0x7c0] sm:$0xff]  ;;  %1861 = vmatprep.subr.bf16.mxu0 %v4500_v18  ;;  %1904 = vmatprep.subr.bf16.mxu1 %v4628_v19  ;;  %v4620_v26 = vcombine.high %v389_v14, %v393_v15  ;;  %v4619_v28 = vcombine.low %v389_v14, %v393_v15  ;;  %v5678_v18 = vld [vmem:[#allocation2 + $0x1c8] sm:$0xff] }
  0x46   :  { %v521_v17 = vld [vmem:[#allocation2 + $0x7e0] sm:$0xff]  ;;  %v5680_v19 = vld [vmem:[#allocation2 + $0x1e8] sm:$0xff] }
  0x47   :  { %v381_v22 = vld [vmem:[#allocation2 + $0x380] sm:$0xff]  ;;  %v4748_v27 = vcombine.high %v517_v16, %v521_v17  ;;  %v4747_v29 = vcombine.low %v517_v16, %v521_v17 }
  0x48   :  { %v385_v23 = vld [vmem:[#allocation2 + $0x3a0] sm:$0xff]  ;;  %1862 = vmatpush1.bf16.msra.mxu0 %v4499_v20  ;;  %1905 = vmatpush1.bf16.msra.mxu1 %v4627_v21  ;;  %v5682_v20 = vld [vmem:[#allocation2 + $0x5c8] sm:$0xff]  ;;  %v4558_v21 = vcombine.high %v5678_v18, %v5680_v19 }
  0x49   :  { %v509_v24 = vld [vmem:[#allocation2 + $0x780] sm:$0xff]  ;;  %1863 = vmatprep.subr.bf16.mxu0 %v4620_v26  ;;  %1906 = vmatprep.subr.bf16.mxu1 %v4748_v27  ;;  %v4612_v34 = vcombine.high %v381_v22, %v385_v23  ;;  %v4611_v36 = vcombine.low %v381_v22, %v385_v23  ;;  %v458_v22 = vld [vmem:[#allocation2 + $0x5e8] sm:$0xff]  ;;  %v4557_v23 = vcombine.low %v5678_v18, %v5680_v19  ;;  %v78_v26 = vlaneseq }
  0x4a   :  { %v513_v25 = vld [vmem:[#allocation2 + $0x7a0] sm:$0xff]  ;;  %v434_v18 = vld [vmem:[#allocation2 + $0x528] sm:$0xff] }
  0x4b   :  { %v373_v30 = vld [vmem:[#allocation2 + $0x340] sm:$0xff]  ;;  %v4740_v35 = vcombine.high %v509_v24, %v513_v25  ;;  %v4739_v37 = vcombine.low %v509_v24, %v513_v25  ;;  %v4685_v24 = vcombine.low %v5682_v20, %v458_v22  ;;  %v4686_v25 = vcombine.high %v5682_v20, %v458_v22 }
  0x4c   :  { %v377_v31 = vld [vmem:[#allocation2 + $0x360] sm:$0xff]  ;;  %1864 = vmatpush2.bf16.msra.mxu0 %v4619_v28  ;;  %1907 = vmatpush2.bf16.msra.mxu1 %v4747_v29  ;;  %v5690_v27 = vshrl.u32 %v78_v26, 7  ;;  %v426_v26 = vld [vmem:[#allocation2 + $0x4e8] sm:$0xff] }
  0x4d   :  { %v501_v32 = vld [vmem:[#allocation2 + $0x740] sm:$0xff]  ;;  %1865 = vmatprep.subr.bf16.mxu0 %v4612_v34  ;;  %1908 = vmatprep.subr.bf16.mxu1 %v4740_v35  ;;  %v4604_v42 = vcombine.high %v373_v30, %v377_v31  ;;  %v4603_v44 = vcombine.low %v373_v30, %v377_v31 }
  0x4e   :  { %v505_v33 = vld [vmem:[#allocation2 + $0x760] sm:$0xff]  ;;  %v5693_v28 = vsub.s32 1, %v5690_v27  ;;  %v5696_v29 = vsub.s32 3, %v5690_v27  ;;  %v5699_v30 = vsub.s32 0, %v5690_v27  ;;  %v5702_v31 = vsub.s32 2, %v5690_v27 }
  0x4f   :  { %v365_v38 = vld [vmem:[#allocation2 + $0x300] sm:$0xff]  ;;  %v4732_v43 = vcombine.high %v501_v32, %v505_v33  ;;  %v4731_v45 = vcombine.low %v501_v32, %v505_v33 }
  0x50   :  { %v369_v39 = vld [vmem:[#allocation2 + $0x320] sm:$0xff]  ;;  %1866 = vmatpush2.bf16.msra.mxu0 %v4611_v36  ;;  %1909 = vmatpush2.bf16.msra.mxu1 %v4739_v37 }
  0x51   :  { %v493_v40 = vld [vmem:[#allocation2 + $0x700] sm:$0xff]  ;;  %1867 = vmatprep.subr.bf16.mxu0 %v4604_v42  ;;  %1910 = vmatprep.subr.bf16.mxu1 %v4732_v43  ;;  %v4596_v50 = vcombine.high %v365_v38, %v369_v39  ;;  %v4595_v52 = vcombine.low %v365_v38, %v369_v39 }
  0x52   :  { %v497_v41 = vld [vmem:[#allocation2 + $0x720] sm:$0xff] }
  0x53   :  { %v357_v46 = vld [vmem:[#allocation2 + $0x2c0] sm:$0xff]  ;;  %v4724_v51 = vcombine.high %v493_v40, %v497_v41  ;;  %v4723_v53 = vcombine.low %v493_v40, %v497_v41 }
  0x54   :  { %v361_v47 = vld [vmem:[#allocation2 + $0x2e0] sm:$0xff]  ;;  %1868 = vmatpush2.bf16.msra.mxu0 %v4603_v44  ;;  %1911 = vmatpush2.bf16.msra.mxu1 %v4731_v45 }
  0x55   :  { %v485_v48 = vld [vmem:[#allocation2 + $0x6c0] sm:$0xff]  ;;  %1869 = vmatprep.subr.bf16.mxu0 %v4596_v50  ;;  %1912 = vmatprep.subr.bf16.mxu1 %v4724_v51  ;;  %v4588_v54 = vcombine.high %v357_v46, %v361_v47  ;;  %v4587_v56 = vcombine.low %v357_v46, %v361_v47 }
  0x56   :  { %v489_v49 = vld [vmem:[#allocation2 + $0x6e0] sm:$0xff] }
  0x57   :  { %v4716_v55 = vcombine.high %v485_v48, %v489_v49  ;;  %v4715_v57 = vcombine.low %v485_v48, %v489_v49  ;;  %v349_v58 = vld [vmem:[#allocation2 + $0x280] sm:$0xff] }
  0x58   :  { %1870 = vmatpush2.bf16.msra.mxu0 %v4595_v52  ;;  %1913 = vmatpush2.bf16.msra.mxu1 %v4723_v53  ;;  %v353_v59 = vld [vmem:[#allocation2 + $0x2a0] sm:$0xff] }
  0x59   :  { %1871 = vmatprep.subr.bf16.mxu0 %v4588_v54  ;;  %1914 = vmatprep.subr.bf16.mxu1 %v4716_v55  ;;  %v477_v60 = vld [vmem:[#allocation2 + $0x680] sm:$0xff]  ;;  %v4580_v61 = vcombine.high %v349_v58, %v353_v59  ;;  %v4579_v63 = vcombine.low %v349_v58, %v353_v59  ;;  %v318_v59 = vld [vmem:[#allocation2 + $0x188] sm:$0xff] }
  0x5a   :  { %v481_v62 = vld [vmem:[#allocation2 + $0x6a0] sm:$0xff] }
  0x5b   :  { %v4707_v0 = vcombine.low %v477_v60, %v481_v62  ;;  %v4708_v1 = vcombine.high %v477_v60, %v481_v62  ;;  %v341_v2 = vld [vmem:[#allocation2 + $0x240] sm:$0xff]  ;;  %v322_v62 = vld [vmem:[#allocation2 + $0x1a8] sm:$0xff] }
  0x5c   :  { %1872 = vmatpush2.bf16.msra.mxu0 %v4587_v56  ;;  %1915 = vmatpush2.bf16.msra.mxu1 %v4715_v57  ;;  %v345_v3 = vld [vmem:[#allocation2 + $0x260] sm:$0xff] }
  0x5d   :  { %1873 = vmatprep.subr.bf16.mxu0 %v4580_v61  ;;  %1916 = vmatprep.subr.bf16.mxu1 %v4708_v1  ;;  %v469_v4 = vld [vmem:[#allocation2 + $0x640] sm:$0xff]  ;;  %v4572_v5 = vcombine.high %v341_v2, %v345_v3  ;;  %v4571_v7 = vcombine.low %v341_v2, %v345_v3 }
  0x5e   :  { %v473_v6 = vld [vmem:[#allocation2 + $0x660] sm:$0xff] }
  0x5f   :  { %v4699_v8 = vcombine.low %v469_v4, %v473_v6  ;;  %v4700_v9 = vcombine.high %v469_v4, %v473_v6  ;;  %v333_v10 = vld [vmem:[#allocation2 + $0x200] sm:$0xff]  ;;  %v4550_v6 = vcombine.high %v318_v59, %v322_v62 }
  0x60   :  { %1874 = vmatpush2.bf16.msra.mxu0 %v4579_v63  ;;  %1917 = vmatpush2.bf16.msra.mxu1 %v4707_v0  ;;  %v337_v11 = vld [vmem:[#allocation2 + $0x220] sm:$0xff]  ;;  %v446_v63 = vld [vmem:[#allocation2 + $0x588] sm:$0xff] }
  0x61   :  { %1875 = vmatprep.subr.bf16.mxu0 %v4572_v5  ;;  %1918 = vmatprep.subr.bf16.mxu1 %v4700_v9  ;;  %v461_v12 = vld [vmem:[#allocation2 + $0x600] sm:$0xff]  ;;  %v4564_v13 = vcombine.high %v333_v10, %v337_v11  ;;  %v4563_v15 = vcombine.low %v333_v10, %v337_v11  ;;  %v450_v0 = vld [vmem:[#allocation2 + $0x5a8] sm:$0xff]  ;;  %v4549_v11 = vcombine.low %v318_v59, %v322_v62 }
  0x62   :  { %v465_v14 = vld [vmem:[#allocation2 + $0x620] sm:$0xff]  ;;  %v310_v5 = vld [vmem:[#allocation2 + $0x148] sm:$0xff] }
  0x63   :  { %v4691_v16 = vcombine.low %v461_v12, %v465_v14  ;;  %v4692_v17 = vcombine.high %v461_v12, %v465_v14  ;;  %v76_v32 = vld [vmem:[%s5914_s2] sm:$0xf]  ;;  %v438_v9 = vld [vmem:[#allocation2 + $0x548] sm:$0xff]  ;;  %v4677_v12 = vcombine.low %v446_v63, %v450_v0 }
  0x64   :  { %1876 = vmatpush2.bf16.msra.mxu0 %v4571_v7  ;;  %1919 = vmatpush2.bf16.msra.mxu1 %v4699_v8  ;;  %v85_v35 = vrot.slane %v76_v32, %v5693_v28  ;;  %v93_v36 = vrot.slane %v76_v32, %v5696_v29  ;;  %v81_v37 = vrot.slane %v76_v32, %v5699_v30  ;;  %v314_v8 = vld [vmem:[#allocation2 + $0x168] sm:$0xff] }
  0x65   :  { %1877 = vmatprep.subr.bf16.mxu0 %v4564_v13  ;;  %1920 = vmatprep.subr.bf16.mxu1 %v4692_v17  ;;  %v89_v38 = vrot.slane %v76_v32, %v5702_v31  ;;  %v4678_v7 = vcombine.high %v446_v63, %v450_v0  ;;  %v442_v10 = vld [vmem:[#allocation2 + $0x568] sm:$0xff]  ;;  %v4542_v13 = vcombine.high %v310_v5, %v314_v8 }
  0x66   :  { %v4670_v14 = vcombine.high %v438_v9, %v442_v10  ;;  %v430_v17 = vld [vmem:[#allocation2 + $0x508] sm:$0xff]  ;;  %v4541_v19 = vcombine.low %v310_v5, %v314_v8  ;;  %v4669_v20 = vcombine.low %v438_v9, %v442_v10 }
  0x67   :  { %v4662_v22 = vcombine.high %v430_v17, %v434_v18  ;;  %v518_v62 = vld [vmem:[#allocation2 + $0x7c8] sm:$0xff] }
  0x68   :  { %1878 = vmatpush2.bf16.msra.mxu0 %v4563_v15  ;;  %1921 = vmatpush2.bf16.msra.mxu1 %v4691_v16  ;;  %v302_v15 = vld [vmem:[#allocation2 + $0x108] sm:$0xff] }
  0x69   :  { %1933 = vmatprep.subr.bf16.mxu0 %v4558_v21  ;;  %1976 = vmatprep.subr.bf16.mxu1 %v4686_v25  ;;  %v306_v16 = vld [vmem:[#allocation2 + $0x128] sm:$0xff] }
  0x6a   :  { %v4534_v21 = vcombine.high %v302_v15, %v306_v16  ;;  %v422_v25 = vld [vmem:[#allocation2 + $0x4c8] sm:$0xff]  ;;  %v4533_v32 = vcombine.low %v302_v15, %v306_v16 }
  0x6b   :  { %v522_v63 = vld [vmem:[#allocation2 + $0x7e8] sm:$0xff] }
  0x6c   :  { %v382_v8 = vld [vmem:[#allocation2 + $0x388] sm:$0xff] }
  0x6d   :  { %v386_v9 = vld [vmem:[#allocation2 + $0x3a8] sm:$0xff] }
  0x6e   :  { %v510_v10 = vld [vmem:[#allocation2 + $0x788] sm:$0xff] }
  0x6f   :  { %v374_v16 = vld [vmem:[#allocation2 + $0x348] sm:$0xff] }
  0xeb   :  { %v205_v33 = vpop.f32.mrf.mxu0  ;;  %v248_v34 = vpop.f32.mrf.mxu1 }
  0xec   :  { %v206_v47 = vadd.f32 %v205_v33, %v81_v37  ;;  %v249_v48 = vadd.f32 %v248_v34, %v89_v38  ;;  %v4661_v33 = vcombine.low %v430_v17, %v434_v18  ;;  %v378_v17 = vld [vmem:[#allocation2 + $0x368] sm:$0xff] }
  0xed   :  { %v207_v39 = vpop.f32.mrf.mxu0  ;;  %v250_v40 = vpop.f32.mrf.mxu1  ;;  %v502_v18 = vld [vmem:[#allocation2 + $0x748] sm:$0xff] }
  0xee   :  { %v208_v43 = vadd.f32 %v207_v39, %v85_v35  ;;  %v251_v44 = vadd.f32 %v250_v40, %v93_v36  ;;  %v257_v60 = vmax.f32 %v206_v47, 0.0  ;;  %v259_v61 = vmax.f32 %v249_v48, 0.0  ;;  %v418_v39 = vld [vmem:[#allocation2 + $0x4a8] sm:$0xff] }
  0xef   :  { %v209_v41 = vpop.f32.mrf.mxu0  ;;  %v252_v42 = vpop.f32.mrf.mxu1  ;;  %v410_v47 = vld [vmem:[#allocation2 + $0x468] sm:$0xff] }
  0xf0   :  { %v210_v45 = vadd.f32 %v209_v41, %v81_v37  ;;  %v253_v46 = vadd.f32 %v252_v42, %v89_v38  ;;  %v258_v55 = vmax.f32 %v208_v43, 0.0  ;;  %v260_v56 = vmax.f32 %v251_v44, 0.0  ;;  %v290_v37 = vld [vmem:[#allocation2 + $0xa8] sm:$0xff] }
  0xf1   :  { %v211_v49 = vpop.f32.mrf.mxu0  ;;  %v254_v50 = vpop.f32.mrf.mxu1  ;;  %v414_v38 = vld [vmem:[#allocation2 + $0x488] sm:$0xff]  ;;  %v4653_v41 = vcombine.low %v422_v25, %v426_v26 }
  0xf2   :  { %v212_v51 = vadd.f32 %v211_v49, %v85_v35  ;;  %v255_v52 = vadd.f32 %v254_v50, %v93_v36  ;;  %v261_v53 = vmax.f32 %v210_v45, 0.0  ;;  %v263_v54 = vmax.f32 %v253_v46, 0.0  ;;  %v286_v36 = vld [vmem:[#allocation2 + $0x88] sm:$0xff] }
  0xf3   :  { %v4654_v35 = vcombine.high %v422_v25, %v426_v26  ;;  %v4518_v42 = vcombine.high %v286_v36, %v290_v37  ;;  %v4646_v43 = vcombine.high %v414_v38, %v418_v39  ;;  %v278_v44 = vld [vmem:[#allocation2 + $0x48] sm:$0xff]  ;;  %v4517_v48 = vcombine.low %v286_v36, %v290_v37 }
  0xf4   :  { %v262_v57 = vmax.f32 %v212_v51, 0.0  ;;  %v264_v58 = vmax.f32 %v255_v52, 0.0  ;;  %v5715_v3 = vpack.c.bf16 %v261_v53, %v257_v60  ;;  %v5717_v4 = vpack.c.bf16 %v263_v54, %v259_v61  ;;  %v282_v45 = vld [vmem:[#allocation2 + $0x68] sm:$0xff] }
  0xf5   :  { %v406_v46 = vld [vmem:[#allocation2 + $0x448] sm:$0xff]  ;;  %v4645_v49 = vcombine.low %v414_v38, %v418_v39  ;;  %v4510_v50 = vcombine.high %v278_v44, %v282_v45 }
  0xf6   :  { %v5711_v1 = vpack.c.bf16 %v262_v57, %v258_v55  ;;  %v5713_v2 = vpack.c.bf16 %v264_v58, %v260_v56  ;;  %v4638_v51 = vcombine.high %v406_v46, %v410_v47  ;;  %v270_v52 = vld [vmem:[#allocation2 + $0x8] sm:$0xff]  ;;  %v4509_v56 = vcombine.low %v278_v44, %v282_v45 }
  0xf7   :  { %v274_v53 = vld [vmem:[#allocation2 + $0x28] sm:$0xff]  ;;  %v4637_v57 = vcombine.low %v406_v46, %v410_v47 }
  0xf8   :  { %1879 = vmatprep.mubr.bf16.mxu0 %v5711_v1  ;;  %1922 = vmatprep.mubr.bf16.mxu1 %v5713_v2  ;;  %v398_v54 = vld [vmem:[#allocation2 + $0x408] sm:$0xff]  ;;  %v4502_v58 = vcombine.high %v270_v52, %v274_v53  ;;  %v4501_v0 = vcombine.low %v270_v52, %v274_v53 }
  0xf9   :  { %1880 = vmatmul.mubr.bf16.vlgmr.msra.gmra.mxu0 %v5715_v3  ;;  %1923 = vmatmul.mubr.bf16.vlgmr.msra.gmra.mxu1 %v5717_v4  ;;  %v402_v55 = vld [vmem:[#allocation2 + $0x428] sm:$0xff] }
  0xfa   :  { %1934 = vmatpush1.bf16.msra.mxu0 %v4557_v23  ;;  %1977 = vmatpush1.bf16.msra.mxu1 %v4685_v24  ;;  %v294_v23 = vld [vmem:[#allocation2 + $0xc8] sm:$0xff]  ;;  %v4630_v59 = vcombine.high %v398_v54, %v402_v55  ;;  %v4629_v5 = vcombine.low %v398_v54, %v402_v55 }
  0xfb   :  { %1965 = vmatprep.mubr.bf16.mxu0 %v5711_v1  ;;  %2008 = vmatprep.mubr.bf16.mxu1 %v5713_v2  ;;  %v298_v24 = vld [vmem:[#allocation2 + $0xe8] sm:$0xff] }
  0xfc   :  { %1935 = vmatprep.subr.bf16.mxu0 %v4550_v6  ;;  %1978 = vmatprep.subr.bf16.mxu1 %v4678_v7  ;;  %v4526_v34 = vcombine.high %v294_v23, %v298_v24  ;;  %v4525_v40 = vcombine.low %v294_v23, %v298_v24  ;;  %v390_v60 = vld [vmem:[#allocation2 + $0x3c8] sm:$0xff]  ;;  %v4750_v7 = vcombine.high %v518_v62, %v522_v63 }
  0xfd   :  { %v394_v61 = vld [vmem:[#allocation2 + $0x3e8] sm:$0xff] }
  0xfe   :  { %1936 = vmatpush1.bf16.msra.mxu0 %v4549_v11  ;;  %1979 = vmatpush1.bf16.msra.mxu1 %v4677_v12  ;;  %v4622_v6 = vcombine.high %v390_v60, %v394_v61  ;;  %v514_v11 = vld [vmem:[#allocation2 + $0x7a8] sm:$0xff]  ;;  %v4621_v12 = vcombine.low %v390_v60, %v394_v61 }
  0xff   :  { %1937 = vmatprep.subr.bf16.mxu0 %v4542_v13  ;;  %1980 = vmatprep.subr.bf16.mxu1 %v4670_v14  ;;  %v4749_v13 = vcombine.low %v518_v62, %v522_v63  ;;  %v4614_v14 = vcombine.high %v382_v8, %v386_v9  ;;  %v4742_v15 = vcombine.high %v510_v10, %v514_v11  ;;  %v366_v24 = vld [vmem:[#allocation2 + $0x308] sm:$0xff] }
 0x100   :  { %v370_v25 = vld [vmem:[#allocation2 + $0x328] sm:$0xff] }
 0x101   :  { %v494_v26 = vld [vmem:[#allocation2 + $0x708] sm:$0xff] }
 0x102   :  { %1938 = vmatpush1.bf16.msra.mxu0 %v4541_v19  ;;  %1981 = vmatpush1.bf16.msra.mxu1 %v4669_v20  ;;  %v506_v19 = vld [vmem:[#allocation2 + $0x768] sm:$0xff]  ;;  %v4613_v20 = vcombine.low %v382_v8, %v386_v9  ;;  %v327_v9 = vld [vmem:[#allocation2 + $0x1d0] sm:$0xff] }
 0x103   :  { %1939 = vmatprep.subr.bf16.mxu0 %v4534_v21  ;;  %1982 = vmatprep.subr.bf16.mxu1 %v4662_v22  ;;  %v4741_v21 = vcombine.low %v510_v10, %v514_v11  ;;  %v4606_v22 = vcombine.high %v374_v16, %v378_v17  ;;  %v4734_v23 = vcombine.high %v502_v18, %v506_v19  ;;  %v358_v37 = vld [vmem:[#allocation2 + $0x2c8] sm:$0xff]  ;;  %v331_v10 = vld [vmem:[#allocation2 + $0x1f0] sm:$0xff] }
 0x104   :  { %v362_v38 = vld [vmem:[#allocation2 + $0x2e8] sm:$0xff]  ;;  %v455_v11 = vld [vmem:[#allocation2 + $0x5d0] sm:$0xff] }
 0x105   :  { %v486_v39 = vld [vmem:[#allocation2 + $0x6c8] sm:$0xff] }
 0x106   :  { %1940 = vmatpush1.bf16.msra.mxu0 %v4533_v32  ;;  %1983 = vmatpush1.bf16.msra.mxu1 %v4661_v33  ;;  %v498_v32 = vld [vmem:[#allocation2 + $0x728] sm:$0xff]  ;;  %v4605_v33 = vcombine.low %v374_v16, %v378_v17  ;;  %v319_v17 = vld [vmem:[#allocation2 + $0x190] sm:$0xff] }
 0x107   :  { %1941 = vmatprep.subr.bf16.mxu0 %v4526_v34  ;;  %1984 = vmatprep.subr.bf16.mxu1 %v4654_v35  ;;  %v4733_v34 = vcombine.low %v502_v18, %v506_v19  ;;  %v4598_v35 = vcombine.high %v366_v24, %v370_v25  ;;  %v4726_v36 = vcombine.high %v494_v26, %v498_v32  ;;  %v350_v45 = vld [vmem:[#allocation2 + $0x288] sm:$0xff]  ;;  %v323_v18 = vld [vmem:[#allocation2 + $0x1b0] sm:$0xff] }
 0x108   :  { %v354_v46 = vld [vmem:[#allocation2 + $0x2a8] sm:$0xff]  ;;  %v447_v19 = vld [vmem:[#allocation2 + $0x590] sm:$0xff] }
 0x109   :  { %v478_v47 = vld [vmem:[#allocation2 + $0x688] sm:$0xff] }
 0x10a   :  { %1942 = vmatpush1.bf16.msra.mxu0 %v4525_v40  ;;  %1985 = vmatpush1.bf16.msra.mxu1 %v4653_v41  ;;  %v490_v40 = vld [vmem:[#allocation2 + $0x6e8] sm:$0xff]  ;;  %v4597_v41 = vcombine.low %v366_v24, %v370_v25  ;;  %v311_v25 = vld [vmem:[#allocation2 + $0x150] sm:$0xff] }
 0x10b   :  { %1943 = vmatprep.subr.bf16.mxu0 %v4518_v42  ;;  %1986 = vmatprep.subr.bf16.mxu1 %v4646_v43  ;;  %v4725_v42 = vcombine.low %v494_v26, %v498_v32  ;;  %v4590_v43 = vcombine.high %v358_v37, %v362_v38  ;;  %v4718_v44 = vcombine.high %v486_v39, %v490_v40  ;;  %v342_v53 = vld [vmem:[#allocation2 + $0x248] sm:$0xff]  ;;  %v315_v26 = vld [vmem:[#allocation2 + $0x170] sm:$0xff] }
 0x10c   :  { %v346_v54 = vld [vmem:[#allocation2 + $0x268] sm:$0xff]  ;;  %v439_v32 = vld [vmem:[#allocation2 + $0x550] sm:$0xff] }
 0x10d   :  { %v470_v55 = vld [vmem:[#allocation2 + $0x648] sm:$0xff] }
 0x10e   :  { %1944 = vmatpush1.bf16.msra.mxu0 %v4517_v48  ;;  %1987 = vmatpush1.bf16.msra.mxu1 %v4645_v49  ;;  %v482_v48 = vld [vmem:[#allocation2 + $0x6a8] sm:$0xff]  ;;  %v4589_v49 = vcombine.low %v358_v37, %v362_v38  ;;  %v303_v38 = vld [vmem:[#allocation2 + $0x110] sm:$0xff] }
 0x10f   :  { %1945 = vmatprep.subr.bf16.mxu0 %v4510_v50  ;;  %1988 = vmatprep.subr.bf16.mxu1 %v4638_v51  ;;  %v4717_v50 = vcombine.low %v486_v39, %v490_v40  ;;  %v4582_v51 = vcombine.high %v350_v45, %v354_v46  ;;  %v4710_v52 = vcombine.high %v478_v47, %v482_v48  ;;  %v334_v61 = vld [vmem:[#allocation2 + $0x208] sm:$0xff]  ;;  %v307_v39 = vld [vmem:[#allocation2 + $0x130] sm:$0xff] }
 0x110   :  { %v338_v62 = vld [vmem:[#allocation2 + $0x228] sm:$0xff]  ;;  %v431_v40 = vld [vmem:[#allocation2 + $0x510] sm:$0xff] }
 0x111   :  { %v462_v63 = vld [vmem:[#allocation2 + $0x608] sm:$0xff] }
 0x112   :  { %1946 = vmatpush1.bf16.msra.mxu0 %v4509_v56  ;;  %1989 = vmatpush1.bf16.msra.mxu1 %v4637_v57  ;;  %v474_v56 = vld [vmem:[#allocation2 + $0x668] sm:$0xff]  ;;  %v4581_v57 = vcombine.low %v350_v45, %v354_v46  ;;  %v295_v46 = vld [vmem:[#allocation2 + $0xd0] sm:$0xff] }
 0x113   :  { %1947 = vmatprep.subr.bf16.mxu0 %v4502_v58  ;;  %1990 = vmatprep.subr.bf16.mxu1 %v4630_v59  ;;  %v4709_v58 = vcombine.low %v478_v47, %v482_v48  ;;  %v4574_v59 = vcombine.high %v342_v53, %v346_v54  ;;  %v4702_v60 = vcombine.high %v470_v55, %v474_v56  ;;  %v299_v47 = vld [vmem:[#allocation2 + $0xf0] sm:$0xff] }
 0x114   :  { %v423_v48 = vld [vmem:[#allocation2 + $0x4d0] sm:$0xff] }
 0x116   :  { %1948 = vmatpush1.bf16.msra.mxu0 %v4501_v0  ;;  %1991 = vmatpush1.bf16.msra.mxu1 %v4629_v5  ;;  %v466_v0 = vld [vmem:[#allocation2 + $0x628] sm:$0xff]  ;;  %v4573_v5 = vcombine.low %v342_v53, %v346_v54  ;;  %v287_v54 = vld [vmem:[#allocation2 + $0x90] sm:$0xff] }
 0x117   :  { %1949 = vmatprep.subr.bf16.mxu0 %v4622_v6  ;;  %1992 = vmatprep.subr.bf16.mxu1 %v4750_v7  ;;  %v4701_v6 = vcombine.low %v470_v55, %v474_v56  ;;  %v4566_v7 = vcombine.high %v334_v61, %v338_v62  ;;  %v4694_v8 = vcombine.high %v462_v63, %v466_v0  ;;  %v291_v55 = vld [vmem:[#allocation2 + $0xb0] sm:$0xff] }
 0x118   :  { %v415_v56 = vld [vmem:[#allocation2 + $0x490] sm:$0xff] }
 0x11a   :  { %1950 = vmatpush2.bf16.msra.mxu0 %v4621_v12  ;;  %1993 = vmatpush2.bf16.msra.mxu1 %v4749_v13  ;;  %v459_v12 = vld [vmem:[#allocation2 + $0x5f0] sm:$0xff]  ;;  %v4565_v13 = vcombine.low %v334_v61, %v338_v62 }
 0x11b   :  { %1951 = vmatprep.subr.bf16.mxu0 %v4614_v14  ;;  %1994 = vmatprep.subr.bf16.mxu1 %v4742_v15  ;;  %v4693_v14 = vcombine.low %v462_v63, %v466_v0  ;;  %v4560_v15 = vcombine.high %v327_v9, %v331_v10  ;;  %v4688_v16 = vcombine.high %v455_v11, %v459_v12  ;;  %v279_v62 = vld [vmem:[#allocation2 + $0x50] sm:$0xff] }
 0x11c   :  { %v283_v63 = vld [vmem:[#allocation2 + $0x70] sm:$0xff] }
 0x11d   :  { %v407_v0 = vld [vmem:[#allocation2 + $0x450] sm:$0xff] }
 0x11e   :  { %1952 = vmatpush2.bf16.msra.mxu0 %v4613_v20  ;;  %1995 = vmatpush2.bf16.msra.mxu1 %v4741_v21  ;;  %v451_v20 = vld [vmem:[#allocation2 + $0x5b0] sm:$0xff]  ;;  %v4559_v21 = vcombine.low %v327_v9, %v331_v10 }
 0x11f   :  { %1953 = vmatprep.subr.bf16.mxu0 %v4606_v22  ;;  %1996 = vmatprep.subr.bf16.mxu1 %v4734_v23  ;;  %v4687_v22 = vcombine.low %v455_v11, %v459_v12  ;;  %v4552_v23 = vcombine.high %v319_v17, %v323_v18  ;;  %v4680_v24 = vcombine.high %v447_v19, %v451_v20  ;;  %v271_v10 = vld [vmem:[#allocation2 + $0x10] sm:$0xff] }
 0x120   :  { %v275_v11 = vld [vmem:[#allocation2 + $0x30] sm:$0xff] }
 0x121   :  { %v399_v12 = vld [vmem:[#allocation2 + $0x410] sm:$0xff] }
 0x122   :  { %1954 = vmatpush2.bf16.msra.mxu0 %v4605_v33  ;;  %1997 = vmatpush2.bf16.msra.mxu1 %v4733_v34  ;;  %v443_v33 = vld [vmem:[#allocation2 + $0x570] sm:$0xff]  ;;  %v4551_v34 = vcombine.low %v319_v17, %v323_v18 }
 0x123   :  { %1955 = vmatprep.subr.bf16.mxu0 %v4598_v35  ;;  %1998 = vmatprep.subr.bf16.mxu1 %v4726_v36  ;;  %v4679_v35 = vcombine.low %v447_v19, %v451_v20  ;;  %v4544_v36 = vcombine.high %v311_v25, %v315_v26  ;;  %v4672_v37 = vcombine.high %v439_v32, %v443_v33  ;;  %v391_v18 = vld [vmem:[#allocation2 + $0x3d0] sm:$0xff] }
 0x124   :  { %v395_v19 = vld [vmem:[#allocation2 + $0x3f0] sm:$0xff] }
 0x125   :  { %v519_v20 = vld [vmem:[#allocation2 + $0x7d0] sm:$0xff] }
 0x126   :  { %1956 = vmatpush2.bf16.msra.mxu0 %v4597_v41  ;;  %1999 = vmatpush2.bf16.msra.mxu1 %v4725_v42  ;;  %v435_v41 = vld [vmem:[#allocation2 + $0x530] sm:$0xff]  ;;  %v4543_v42 = vcombine.low %v311_v25, %v315_v26 }
 0x127   :  { %1957 = vmatprep.subr.bf16.mxu0 %v4590_v43  ;;  %2000 = vmatprep.subr.bf16.mxu1 %v4718_v44  ;;  %v4671_v43 = vcombine.low %v439_v32, %v443_v33  ;;  %v4536_v44 = vcombine.high %v303_v38, %v307_v39  ;;  %v4664_v45 = vcombine.high %v431_v40, %v435_v41  ;;  %v383_v26 = vld [vmem:[#allocation2 + $0x390] sm:$0xff] }
 0x128   :  { %v387_v32 = vld [vmem:[#allocation2 + $0x3b0] sm:$0xff] }
 0x129   :  { %v511_v33 = vld [vmem:[#allocation2 + $0x790] sm:$0xff] }
 0x12a   :  { %1958 = vmatpush2.bf16.msra.mxu0 %v4589_v49  ;;  %2001 = vmatpush2.bf16.msra.mxu1 %v4717_v50  ;;  %v427_v49 = vld [vmem:[#allocation2 + $0x4f0] sm:$0xff]  ;;  %v4535_v50 = vcombine.low %v303_v38, %v307_v39 }
 0x12b   :  { %1959 = vmatprep.subr.bf16.mxu0 %v4582_v51  ;;  %2002 = vmatprep.subr.bf16.mxu1 %v4710_v52  ;;  %v4663_v51 = vcombine.low %v431_v40, %v435_v41  ;;  %v4528_v52 = vcombine.high %v295_v46, %v299_v47  ;;  %v4656_v53 = vcombine.high %v423_v48, %v427_v49  ;;  %v375_v39 = vld [vmem:[#allocation2 + $0x350] sm:$0xff] }
 0x12c   :  { %v379_v40 = vld [vmem:[#allocation2 + $0x370] sm:$0xff] }
 0x12d   :  { %v503_v41 = vld [vmem:[#allocation2 + $0x750] sm:$0xff] }
 0x12e   :  { %1960 = vmatpush2.bf16.msra.mxu0 %v4581_v57  ;;  %2003 = vmatpush2.bf16.msra.mxu1 %v4709_v58  ;;  %v419_v57 = vld [vmem:[#allocation2 + $0x4b0] sm:$0xff]  ;;  %v4527_v58 = vcombine.low %v295_v46, %v299_v47 }
 0x12f   :  { %1961 = vmatprep.subr.bf16.mxu0 %v4574_v59  ;;  %2004 = vmatprep.subr.bf16.mxu1 %v4702_v60  ;;  %v4655_v59 = vcombine.low %v423_v48, %v427_v49  ;;  %v4520_v60 = vcombine.high %v287_v54, %v291_v55  ;;  %v4648_v61 = vcombine.high %v415_v56, %v419_v57  ;;  %v367_v47 = vld [vmem:[#allocation2 + $0x310] sm:$0xff] }
 0x130   :  { %v371_v48 = vld [vmem:[#allocation2 + $0x330] sm:$0xff] }
 0x131   :  { %v495_v49 = vld [vmem:[#allocation2 + $0x710] sm:$0xff] }
 0x132   :  { %1962 = vmatpush2.bf16.msra.mxu0 %v4573_v5  ;;  %2005 = vmatpush2.bf16.msra.mxu1 %v4701_v6  ;;  %v411_v5 = vld [vmem:[#allocation2 + $0x470] sm:$0xff]  ;;  %v4519_v6 = vcombine.low %v287_v54, %v291_v55 }
 0x133   :  { %1963 = vmatprep.subr.bf16.mxu0 %v4566_v7  ;;  %2006 = vmatprep.subr.bf16.mxu1 %v4694_v8  ;;  %v4647_v7 = vcombine.low %v415_v56, %v419_v57  ;;  %v4512_v8 = vcombine.high %v279_v62, %v283_v63  ;;  %v4640_v9 = vcombine.high %v407_v0, %v411_v5  ;;  %v359_v55 = vld [vmem:[#allocation2 + $0x2d0] sm:$0xff] }
 0x134   :  { %v363_v56 = vld [vmem:[#allocation2 + $0x2f0] sm:$0xff] }
 0x135   :  { %v487_v57 = vld [vmem:[#allocation2 + $0x6d0] sm:$0xff] }
 0x136   :  { %1964 = vmatpush2.bf16.msra.mxu0 %v4565_v13  ;;  %2007 = vmatpush2.bf16.msra.mxu1 %v4693_v14  ;;  %v403_v13 = vld [vmem:[#allocation2 + $0x430] sm:$0xff]  ;;  %v4511_v14 = vcombine.low %v279_v62, %v283_v63 }
 0x137   :  { %2019 = vmatprep.subr.bf16.mxu0 %v4560_v15  ;;  %2062 = vmatprep.subr.bf16.mxu1 %v4688_v16  ;;  %v4639_v15 = vcombine.low %v407_v0, %v411_v5  ;;  %v4504_v16 = vcombine.high %v271_v10, %v275_v11  ;;  %v4632_v17 = vcombine.high %v399_v12, %v403_v13  ;;  %v351_v63 = vld [vmem:[#allocation2 + $0x290] sm:$0xff] }
 0x138   :  { %v355_v0 = vld [vmem:[#allocation2 + $0x2b0] sm:$0xff] }
 0x139   :  { %1966 = vmatmul.mubr.bf16.vlgmr.msra.gmra.mxu0 %v5715_v3  ;;  %2009 = vmatmul.mubr.bf16.vlgmr.msra.gmra.mxu1 %v5717_v4  ;;  %v479_v5 = vld [vmem:[#allocation2 + $0x690] sm:$0xff] }
 0x13a   :  { %2020 = vmatpush1.bf16.msra.mxu0 %v4559_v21  ;;  %2051 = vmatprep.mubr.bf16.mxu0 %v5711_v1  ;;  %v523_v21 = vld [vmem:[#allocation2 + $0x7f0] sm:$0xff] }
 0x13b   :  { %2063 = vmatpush1.bf16.msra.mxu1 %v4687_v22  ;;  %2094 = vmatprep.mubr.bf16.mxu1 %v5713_v2  ;;  %v4503_v22 = vcombine.low %v271_v10, %v275_v11  ;;  %v4752_v25 = vcombine.high %v519_v20, %v523_v21  ;;  %v343_v11 = vld [vmem:[#allocation2 + $0x250] sm:$0xff] }
 0x13c   :  { %2021 = vmatprep.subr.bf16.mxu0 %v4552_v23  ;;  %2064 = vmatprep.subr.bf16.mxu1 %v4680_v24  ;;  %v4631_v23 = vcombine.low %v399_v12, %v403_v13  ;;  %v4624_v24 = vcombine.high %v391_v18, %v395_v19  ;;  %v347_v12 = vld [vmem:[#allocation2 + $0x270] sm:$0xff] }
 0x13d   :  { %v471_v13 = vld [vmem:[#allocation2 + $0x650] sm:$0xff] }
 0x13e   :  { %2022 = vmatpush1.bf16.msra.mxu0 %v4551_v34  ;;  %v515_v34 = vld [vmem:[#allocation2 + $0x7b0] sm:$0xff] }
 0x13f   :  { %2065 = vmatpush1.bf16.msra.mxu1 %v4679_v35  ;;  %2023 = vmatprep.subr.bf16.mxu0 %v4544_v36  ;;  %v4623_v35 = vcombine.low %v391_v18, %v395_v19  ;;  %v4751_v36 = vcombine.low %v519_v20, %v523_v21  ;;  %v4744_v38 = vcombine.high %v511_v33, %v515_v34  ;;  %v335_v19 = vld [vmem:[#allocation2 + $0x210] sm:$0xff] }
 0x140   :  { %2066 = vmatprep.subr.bf16.mxu1 %v4672_v37  ;;  %v4616_v37 = vcombine.high %v383_v26, %v387_v32  ;;  %v339_v20 = vld [vmem:[#allocation2 + $0x230] sm:$0xff] }
 0x141   :  { %v463_v21 = vld [vmem:[#allocation2 + $0x610] sm:$0xff] }
 0x142   :  { %2024 = vmatpush1.bf16.msra.mxu0 %v4543_v42  ;;  %v507_v42 = vld [vmem:[#allocation2 + $0x770] sm:$0xff] }
 0x143   :  { %2067 = vmatpush1.bf16.msra.mxu1 %v4671_v43  ;;  %2025 = vmatprep.subr.bf16.mxu0 %v4536_v44  ;;  %v4615_v43 = vcombine.low %v383_v26, %v387_v32  ;;  %v4743_v44 = vcombine.low %v511_v33, %v515_v34  ;;  %v4736_v46 = vcombine.high %v503_v41, %v507_v42  ;;  %v328_v32 = vld [vmem:[#allocation2 + $0x1d8] sm:$0xff] }
 0x144   :  { %2068 = vmatprep.subr.bf16.mxu1 %v4664_v45  ;;  %v4608_v45 = vcombine.high %v375_v39, %v379_v40  ;;  %v332_v33 = vld [vmem:[#allocation2 + $0x1f8] sm:$0xff] }
 0x145   :  { %v456_v34 = vld [vmem:[#allocation2 + $0x5d8] sm:$0xff] }
 0x146   :  { %2026 = vmatpush1.bf16.msra.mxu0 %v4535_v50  ;;  %v499_v50 = vld [vmem:[#allocation2 + $0x730] sm:$0xff] }
 0x147   :  { %2069 = vmatpush1.bf16.msra.mxu1 %v4663_v51  ;;  %2027 = vmatprep.subr.bf16.mxu0 %v4528_v52  ;;  %v4607_v51 = vcombine.low %v375_v39, %v379_v40  ;;  %v4735_v52 = vcombine.low %v503_v41, %v507_v42  ;;  %v4728_v54 = vcombine.high %v495_v49, %v499_v50  ;;  %v320_v40 = vld [vmem:[#allocation2 + $0x198] sm:$0xff] }
 0x148   :  { %2070 = vmatprep.subr.bf16.mxu1 %v4656_v53  ;;  %v4600_v53 = vcombine.high %v367_v47, %v371_v48  ;;  %v324_v41 = vld [vmem:[#allocation2 + $0x1b8] sm:$0xff]  ;;  %v4561_v42 = vcombine.low %v328_v32, %v332_v33 }
 0x14a   :  { %2028 = vmatpush1.bf16.msra.mxu0 %v4527_v58  ;;  %v491_v58 = vld [vmem:[#allocation2 + $0x6f0] sm:$0xff] }
 0x14b   :  { %2071 = vmatpush1.bf16.msra.mxu1 %v4655_v59  ;;  %2029 = vmatprep.subr.bf16.mxu0 %v4520_v60  ;;  %v4599_v59 = vcombine.low %v367_v47, %v371_v48  ;;  %v4727_v60 = vcombine.low %v495_v49, %v499_v50  ;;  %v4720_v62 = vcombine.high %v487_v57, %v491_v58  ;;  %v312_v47 = vld [vmem:[#allocation2 + $0x158] sm:$0xff] }
 0x14c   :  { %2072 = vmatprep.subr.bf16.mxu1 %v4648_v61  ;;  %v4592_v61 = vcombine.high %v359_v55, %v363_v56  ;;  %v316_v48 = vld [vmem:[#allocation2 + $0x178] sm:$0xff] }
 0x14d   :  { %v440_v50 = vld [vmem:[#allocation2 + $0x558] sm:$0xff] }
 0x14e   :  { %2030 = vmatpush1.bf16.msra.mxu0 %v4519_v6  ;;  %v483_v6 = vld [vmem:[#allocation2 + $0x6b0] sm:$0xff] }
 0x14f   :  { %2073 = vmatpush1.bf16.msra.mxu1 %v4647_v7  ;;  %2031 = vmatprep.subr.bf16.mxu0 %v4512_v8  ;;  %v4591_v7 = vcombine.low %v359_v55, %v363_v56  ;;  %v4719_v8 = vcombine.low %v487_v57, %v491_v58  ;;  %v4712_v10 = vcombine.high %v479_v5, %v483_v6  ;;  %v304_v56 = vld [vmem:[#allocation2 + $0x118] sm:$0xff] }
 0x150   :  { %2074 = vmatprep.subr.bf16.mxu1 %v4640_v9  ;;  %v4584_v9 = vcombine.high %v351_v63, %v355_v0  ;;  %v308_v57 = vld [vmem:[#allocation2 + $0x138] sm:$0xff] }
 0x151   :  { %v432_v58 = vld [vmem:[#allocation2 + $0x518] sm:$0xff] }
 0x152   :  { %2032 = vmatpush1.bf16.msra.mxu0 %v4511_v14  ;;  %v475_v14 = vld [vmem:[#allocation2 + $0x670] sm:$0xff] }
 0x153   :  { %2075 = vmatpush1.bf16.msra.mxu1 %v4639_v15  ;;  %2033 = vmatprep.subr.bf16.mxu0 %v4504_v16  ;;  %v4583_v15 = vcombine.low %v351_v63, %v355_v0  ;;  %v4711_v16 = vcombine.low %v479_v5, %v483_v6  ;;  %v4704_v18 = vcombine.high %v471_v13, %v475_v14  ;;  %v296_v63 = vld [vmem:[#allocation2 + $0xd8] sm:$0xff] }
 0x154   :  { %2076 = vmatprep.subr.bf16.mxu1 %v4632_v17  ;;  %v4576_v17 = vcombine.high %v343_v11, %v347_v12  ;;  %v300_v0 = vld [vmem:[#allocation2 + $0xf8] sm:$0xff] }
 0x155   :  { %v424_v5 = vld [vmem:[#allocation2 + $0x4d8] sm:$0xff] }
 0x156   :  { %2034 = vmatpush1.bf16.msra.mxu0 %v4503_v22  ;;  %v467_v22 = vld [vmem:[#allocation2 + $0x630] sm:$0xff]  ;;  %v428_v6 = vld [vmem:[#allocation2 + $0x4f8] sm:$0xff] }
 0x157   :  { %2077 = vmatpush1.bf16.msra.mxu1 %v4631_v23  ;;  %2035 = vmatprep.subr.bf16.mxu0 %v4624_v24  ;;  %v4575_v23 = vcombine.low %v343_v11, %v347_v12  ;;  %v4703_v24 = vcombine.low %v471_v13, %v475_v14  ;;  %v4696_v26 = vcombine.high %v463_v21, %v467_v22  ;;  %v292_v11 = vld [vmem:[#allocation2 + $0xb8] sm:$0xff] }
 0x158   :  { %2078 = vmatprep.subr.bf16.mxu1 %v4752_v25  ;;  %v4568_v25 = vcombine.high %v335_v19, %v339_v20  ;;  %v416_v12 = vld [vmem:[#allocation2 + $0x498] sm:$0xff]  ;;  %v4529_v14 = vcombine.low %v296_v63, %v300_v0 }
 0x159   :  { %v420_v13 = vld [vmem:[#allocation2 + $0x4b8] sm:$0xff] }
 0x15a   :  { %2036 = vmatpush2.bf16.msra.mxu0 %v4623_v35  ;;  %v460_v35 = vld [vmem:[#allocation2 + $0x5f8] sm:$0xff] }
 0x15b   :  { %2079 = vmatpush2.bf16.msra.mxu1 %v4751_v36  ;;  %2037 = vmatprep.subr.bf16.mxu0 %v4616_v37  ;;  %v4567_v36 = vcombine.low %v335_v19, %v339_v20  ;;  %v4695_v37 = vcombine.low %v463_v21, %v467_v22  ;;  %v4690_v39 = vcombine.high %v456_v34, %v460_v35  ;;  %v284_v19 = vld [vmem:[#allocation2 + $0x78] sm:$0xff] }
 0x15c   :  { %2080 = vmatprep.subr.bf16.mxu1 %v4744_v38  ;;  %v4562_v38 = vcombine.high %v328_v32, %v332_v33  ;;  %v408_v20 = vld [vmem:[#allocation2 + $0x458] sm:$0xff] }
 0x15d   :  { %v412_v21 = vld [vmem:[#allocation2 + $0x478] sm:$0xff] }
 0x15e   :  { %2038 = vmatpush2.bf16.msra.mxu0 %v4615_v43  ;;  %v448_v43 = vld [vmem:[#allocation2 + $0x598] sm:$0xff] }
 0x15f   :  { %2081 = vmatpush2.bf16.msra.mxu1 %v4743_v44  ;;  %2039 = vmatprep.subr.bf16.mxu0 %v4608_v45  ;;  %v452_v44 = vld [vmem:[#allocation2 + $0x5b8] sm:$0xff]  ;;  %v4689_v45 = vcombine.low %v456_v34, %v460_v35 }
 0x160   :  { %2082 = vmatprep.subr.bf16.mxu1 %v4736_v46  ;;  %v4554_v46 = vcombine.high %v320_v40, %v324_v41  ;;  %v4682_v49 = vcombine.high %v448_v43, %v452_v44  ;;  %v276_v32 = vld [vmem:[#allocation2 + $0x38] sm:$0xff] }
 0x161   :  { %v400_v33 = vld [vmem:[#allocation2 + $0x418] sm:$0xff] }
 0x162   :  { %2040 = vmatpush2.bf16.msra.mxu0 %v4607_v51  ;;  %v444_v51 = vld [vmem:[#allocation2 + $0x578] sm:$0xff] }
 0x163   :  { %2083 = vmatpush2.bf16.msra.mxu1 %v4735_v52  ;;  %2041 = vmatprep.subr.bf16.mxu0 %v4600_v53  ;;  %v4553_v52 = vcombine.low %v320_v40, %v324_v41  ;;  %v4681_v53 = vcombine.low %v448_v43, %v452_v44  ;;  %v4674_v55 = vcombine.high %v440_v50, %v444_v51  ;;  %v404_v34 = vld [vmem:[#allocation2 + $0x438] sm:$0xff] }
 0x164   :  { %2084 = vmatprep.subr.bf16.mxu1 %v4728_v54  ;;  %v4546_v54 = vcombine.high %v312_v47, %v316_v48  ;;  %v396_v40 = vld [vmem:[#allocation2 + $0x3f8] sm:$0xff]  ;;  %v4633_v44 = vcombine.low %v400_v33, %v404_v34 }
 0x165   :  { %v520_v41 = vld [vmem:[#allocation2 + $0x7d8] sm:$0xff] }
 0x166   :  { %2042 = vmatpush2.bf16.msra.mxu0 %v4599_v59  ;;  %v436_v59 = vld [vmem:[#allocation2 + $0x538] sm:$0xff] }
 0x167   :  { %2085 = vmatpush2.bf16.msra.mxu1 %v4727_v60  ;;  %2043 = vmatprep.subr.bf16.mxu0 %v4592_v61  ;;  %v4545_v60 = vcombine.low %v312_v47, %v316_v48  ;;  %v4673_v61 = vcombine.low %v440_v50, %v444_v51  ;;  %v384_v47 = vld [vmem:[#allocation2 + $0x398] sm:$0xff] }
 0x168   :  { %2086 = vmatprep.subr.bf16.mxu1 %v4720_v62  ;;  %v4538_v62 = vcombine.high %v304_v56, %v308_v57  ;;  %v388_v48 = vld [vmem:[#allocation2 + $0x3b8] sm:$0xff] }
 0x169   :  { %v516_v50 = vld [vmem:[#allocation2 + $0x7b8] sm:$0xff] }
 0x16a   :  { %2044 = vmatpush2.bf16.msra.mxu0 %v4591_v7  ;;  %v4665_v7 = vcombine.low %v432_v58, %v436_v59 }
 0x16b   :  { %2087 = vmatpush2.bf16.msra.mxu1 %v4719_v8  ;;  %2045 = vmatprep.subr.bf16.mxu0 %v4584_v9  ;;  %v4530_v8 = vcombine.high %v296_v63, %v300_v0  ;;  %v4658_v9 = vcombine.high %v424_v5, %v428_v6  ;;  %v372_v63 = vld [vmem:[#allocation2 + $0x338] sm:$0xff] }
 0x16c   :  { %2088 = vmatprep.subr.bf16.mxu1 %v4712_v10  ;;  %v288_v10 = vld [vmem:[#allocation2 + $0x98] sm:$0xff] }
 0x16d   :  { %v4521_v22 = vcombine.low %v288_v10, %v292_v11  ;;  %v496_v0 = vld [vmem:[#allocation2 + $0x718] sm:$0xff] }
 0x16e   :  { %2046 = vmatpush2.bf16.msra.mxu0 %v4583_v15  ;;  %v4657_v15 = vcombine.low %v424_v5, %v428_v6  ;;  %v500_v5 = vld [vmem:[#allocation2 + $0x738] sm:$0xff] }
 0x16f   :  { %2089 = vmatpush2.bf16.msra.mxu1 %v4711_v16  ;;  %2047 = vmatprep.subr.bf16.mxu0 %v4576_v17  ;;  %v4522_v16 = vcombine.high %v288_v10, %v292_v11  ;;  %v4650_v17 = vcombine.high %v416_v12, %v420_v13  ;;  %v364_v10 = vld [vmem:[#allocation2 + $0x2f8] sm:$0xff] }
 0x170   :  { %2090 = vmatprep.subr.bf16.mxu1 %v4704_v18  ;;  %v280_v18 = vld [vmem:[#allocation2 + $0x58] sm:$0xff] }
 0x171   :  { %v4513_v35 = vcombine.low %v280_v18, %v284_v19  ;;  %v488_v11 = vld [vmem:[#allocation2 + $0x6d8] sm:$0xff] }
 0x172   :  { %2048 = vmatpush2.bf16.msra.mxu0 %v4575_v23  ;;  %v4649_v23 = vcombine.low %v416_v12, %v420_v13  ;;  %v492_v12 = vld [vmem:[#allocation2 + $0x6f8] sm:$0xff] }
 0x173   :  { %2091 = vmatpush2.bf16.msra.mxu1 %v4703_v24  ;;  %2049 = vmatprep.subr.bf16.mxu0 %v4568_v25  ;;  %v4514_v24 = vcombine.high %v280_v18, %v284_v19  ;;  %v4642_v25 = vcombine.high %v408_v20, %v412_v21  ;;  %v356_v18 = vld [vmem:[#allocation2 + $0x2b8] sm:$0xff] }
 0x174   :  { %2092 = vmatprep.subr.bf16.mxu1 %v4696_v26  ;;  %v272_v26 = vld [vmem:[#allocation2 + $0x18] sm:$0xff] }
 0x175   :  { %v4505_v43 = vcombine.low %v272_v26, %v276_v32  ;;  %v480_v19 = vld [vmem:[#allocation2 + $0x698] sm:$0xff] }
 0x176   :  { %2050 = vmatpush2.bf16.msra.mxu0 %v4567_v36  ;;  %v4641_v36 = vcombine.low %v408_v20, %v412_v21  ;;  %v484_v20 = vld [vmem:[#allocation2 + $0x6b8] sm:$0xff] }
 0x177   :  { %2093 = vmatpush2.bf16.msra.mxu1 %v4695_v37  ;;  %2105 = vmatprep.subr.bf16.mxu0 %v4562_v38  ;;  %v4506_v37 = vcombine.high %v272_v26, %v276_v32  ;;  %v4634_v38 = vcombine.high %v400_v33, %v404_v34  ;;  %v348_v26 = vld [vmem:[#allocation2 + $0x278] sm:$0xff] }
 0x178   :  { %2148 = vmatprep.subr.bf16.mxu1 %v4690_v39  ;;  %v392_v39 = vld [vmem:[#allocation2 + $0x3d8] sm:$0xff] }
 0x179   :  { %2052 = vmatmul.mubr.bf16.vlgmr.msra.gmra.mxu0 %v5715_v3  ;;  %v4625_v51 = vcombine.low %v392_v39, %v396_v40  ;;  %v472_v32 = vld [vmem:[#allocation2 + $0x658] sm:$0xff] }
 0x17a   :  { %2095 = vmatmul.mubr.bf16.vlgmr.msra.gmra.mxu1 %v5717_v4  ;;  %2106 = vmatpush1.bf16.msra.mxu0 %v4561_v42  ;;  %v524_v42 = vld [vmem:[#allocation2 + $0x7f8] sm:$0xff] }
 0x17b   :  { %2137 = vmatprep.mubr.bf16.mxu0 %v5711_v1  ;;  %2149 = vmatpush1.bf16.msra.mxu1 %v4689_v45  ;;  %v4666_v1 = vcombine.high %v432_v58, %v436_v59  ;;  %v4626_v45 = vcombine.high %v392_v39, %v396_v40  ;;  %v508_v58 = vld [vmem:[#allocation2 + $0x778] sm:$0xff]  ;;  %v4617_v59 = vcombine.low %v384_v47, %v388_v48 }
 0x17c   :  { %2180 = vmatprep.mubr.bf16.mxu1 %v5713_v2  ;;  %2107 = vmatprep.subr.bf16.mxu0 %v4554_v46  ;;  %v4537_v2 = vcombine.low %v304_v56, %v308_v57  ;;  %v4754_v46 = vcombine.high %v520_v41, %v524_v42  ;;  %v380_v56 = vld [vmem:[#allocation2 + $0x378] sm:$0xff] }
 0x17d   :  { %2150 = vmatprep.subr.bf16.mxu1 %v4682_v49  ;;  %v512_v49 = vld [vmem:[#allocation2 + $0x798] sm:$0xff] }
 0x17e   :  { %2108 = vmatpush1.bf16.msra.mxu0 %v4553_v52  ;;  %v4753_v52 = vcombine.low %v520_v41, %v524_v42  ;;  %v504_v57 = vld [vmem:[#allocation2 + $0x758] sm:$0xff] }
 0x17f   :  { %2151 = vmatpush1.bf16.msra.mxu1 %v4681_v53  ;;  %2109 = vmatprep.subr.bf16.mxu0 %v4546_v54  ;;  %v4618_v53 = vcombine.high %v384_v47, %v388_v48  ;;  %v4746_v54 = vcombine.high %v512_v49, %v516_v50  ;;  %v476_v33 = vld [vmem:[#allocation2 + $0x678] sm:$0xff]  ;;  %v5115_v48 = vld [vmem:[#allocation4 + $0xe4] ss:$16 sps:$4 sm:$0xff]  }
 0x180   :  { %2152 = vmatprep.subr.bf16.mxu1 %v4674_v55  ;;  %v376_v55 = vld [vmem:[#allocation2 + $0x358] sm:$0xff] }
 0x181   :  { %v4609_v6 = vcombine.low %v376_v55, %v380_v56  ;;  %v340_v39 = vld [vmem:[#allocation2 + $0x238] sm:$0xff] }
 0x182   :  { %2110 = vmatpush1.bf16.msra.mxu0 %v4545_v60  ;;  %v4745_v60 = vcombine.low %v512_v49, %v516_v50  ;;  %v464_v40 = vld [vmem:[#allocation2 + $0x618] sm:$0xff]  ;;  %v5130_v49 = vld [vmem:[#allocation4 + $0x2e4] ss:$16 sps:$4 sm:$0xff]   ;;  %v5113_v50 = vld [vmem:[#allocation4 + $0xe0] ss:$16 sps:$4 sm:$0xff]  }
 0x183   :  { %2153 = vmatpush1.bf16.msra.mxu1 %v4673_v61  ;;  %2111 = vmatprep.subr.bf16.mxu0 %v4538_v62  ;;  %v4610_v61 = vcombine.high %v376_v55, %v380_v56  ;;  %v4738_v62 = vcombine.high %v504_v57, %v508_v58  ;;  %v468_v41 = vld [vmem:[#allocation2 + $0x638] sm:$0xff]  ;;  %v5136_v55 = vld [vmem:[#allocation4 + $0x2c4] ss:$16 sps:$4 sm:$0xff]  }
 0x184   :  { %2154 = vmatprep.subr.bf16.mxu1 %v4666_v1  ;;  %v368_v1 = vld [vmem:[#allocation2 + $0x318] sm:$0xff]  ;;  %v4697_v47 = vcombine.low %v464_v40, %v468_v41 }
 0x185   :  { %v4601_v13 = vcombine.low %v368_v1, %v372_v63 }
 0x186   :  { %2112 = vmatpush1.bf16.msra.mxu0 %v4537_v2  ;;  %v4737_v2 = vcombine.low %v504_v57, %v508_v58  ;;  %v5116_v58 = vld [vmem:[#allocation4 + $0xc0] ss:$16 sps:$4 sm:$0xff]  }
 0x187   :  { %2155 = vmatpush1.bf16.msra.mxu1 %v4665_v7  ;;  %2113 = vmatprep.subr.bf16.mxu0 %v4530_v8  ;;  %v4602_v7 = vcombine.high %v368_v1, %v372_v63  ;;  %v4730_v8 = vcombine.high %v496_v0, %v500_v5  ;;  %v5142_v63 = vld [vmem:[#allocation4 + $0x2a4] ss:$16 sps:$4 sm:$0xff]  }
 0x188   :  { %2156 = vmatprep.subr.bf16.mxu1 %v4658_v9  ;;  %v360_v9 = vld [vmem:[#allocation2 + $0x2d8] sm:$0xff] }
 0x189   :  { %v4593_v21 = vcombine.low %v360_v9, %v364_v10 }
 0x18a   :  { %2114 = vmatpush1.bf16.msra.mxu0 %v4529_v14  ;;  %v4729_v14 = vcombine.low %v496_v0, %v500_v5  ;;  %v5119_v5 = vld [vmem:[#allocation4 + $0xa0] ss:$16 sps:$4 sm:$0xff]  }
 0x18b   :  { %2157 = vmatpush1.bf16.msra.mxu1 %v4657_v15  ;;  %2115 = vmatprep.subr.bf16.mxu0 %v4522_v16  ;;  %v4594_v15 = vcombine.high %v360_v9, %v364_v10  ;;  %v4722_v16 = vcombine.high %v488_v11, %v492_v12  ;;  %v5148_v9 = vld [vmem:[#allocation4 + $0x284] ss:$16 sps:$4 sm:$0xff]  }
 0x18c   :  { %2158 = vmatprep.subr.bf16.mxu1 %v4650_v17  ;;  %v352_v17 = vld [vmem:[#allocation2 + $0x298] sm:$0xff] }
 0x18d   :  { %v4585_v34 = vcombine.low %v352_v17, %v356_v18 }
 0x18e   :  { %2116 = vmatpush1.bf16.msra.mxu0 %v4521_v22  ;;  %v4721_v22 = vcombine.low %v488_v11, %v492_v12  ;;  %v5122_v12 = vld [vmem:[#allocation4 + $0x80] ss:$16 sps:$4 sm:$0xff]  }
 0x18f   :  { %2159 = vmatpush1.bf16.msra.mxu1 %v4649_v23  ;;  %2117 = vmatprep.subr.bf16.mxu0 %v4514_v24  ;;  %v4586_v23 = vcombine.high %v352_v17, %v356_v18  ;;  %v4714_v24 = vcombine.high %v480_v19, %v484_v20  ;;  %v5154_v17 = vld [vmem:[#allocation4 + $0x264] ss:$16 sps:$4 sm:$0xff]  }
 0x190   :  { %2160 = vmatprep.subr.bf16.mxu1 %v4642_v25  ;;  %v344_v25 = vld [vmem:[#allocation2 + $0x258] sm:$0xff] }
 0x191   :  { %v4577_v42 = vcombine.low %v344_v25, %v348_v26 }
 0x192   :  { %2118 = vmatpush1.bf16.msra.mxu0 %v4513_v35  ;;  %v4713_v35 = vcombine.low %v480_v19, %v484_v20  ;;  %v5125_v19 = vld [vmem:[#allocation4 + $0x60] ss:$16 sps:$4 sm:$0xff]   ;;  %v5133_v20 = vld [vmem:[#allocation4 + $0x44] ss:$16 sps:$4 sm:$0xff]  }
 0x193   :  { %2161 = vmatpush1.bf16.msra.mxu1 %v4641_v36  ;;  %2119 = vmatprep.subr.bf16.mxu0 %v4506_v37  ;;  %v4578_v36 = vcombine.high %v344_v25, %v348_v26  ;;  %v4706_v37 = vcombine.high %v472_v32, %v476_v33  ;;  %v5158_v25 = vld [vmem:[#allocation4 + $0x240] ss:$16 sps:$4 sm:$0xff]   ;;  %v5166_v26 = vld [vmem:[#allocation4 + $0x224] ss:$16 sps:$4 sm:$0xff]  }
 0x194   :  { %2162 = vmatprep.subr.bf16.mxu1 %v4634_v38  ;;  %v336_v38 = vld [vmem:[#allocation2 + $0x218] sm:$0xff] }
 0x196   :  { %2120 = vmatpush1.bf16.msra.mxu0 %v4505_v43  ;;  %v4705_v43 = vcombine.low %v472_v32, %v476_v33  ;;  %v5137_v32 = vld [vmem:[#allocation4 + $0x20] ss:$16 sps:$4 sm:$0xff]   ;;  %v5145_v33 = vld [vmem:[#allocation4 + $0x4] ss:$16 sps:$4 sm:$0xff]  }
 0x197   :  { %2163 = vmatpush1.bf16.msra.mxu1 %v4633_v44  ;;  %2121 = vmatprep.subr.bf16.mxu0 %v4626_v45  ;;  %v4570_v44 = vcombine.high %v336_v38, %v340_v39  ;;  %v4698_v45 = vcombine.high %v464_v40, %v468_v41  ;;  %v5149_v40 = vld [vmem:[#allocation4 + $0x1e0] ss:$16 sps:$4 sm:$0xff]   ;;  %v5157_v41 = vld [vmem:[#allocation4 + $0x1c4] ss:$16 sps:$4 sm:$0xff]  }
 0x198   :  { %2164 = vmatprep.subr.bf16.mxu1 %v4754_v46  ;;  %v4569_v46 = vcombine.low %v336_v38, %v340_v39  ;;  %v5170_v38 = vld [vmem:[#allocation4 + $0x200] ss:$16 sps:$4 sm:$0xff]   ;;  %v5178_v39 = vld [vmem:[#allocation4 + $0x3e4] ss:$16 sps:$4 sm:$0xff]  }
 0x19a   :  { %2122 = vmatpush2.bf16.msra.mxu0 %v4625_v51  ;;  %v5736_v51 = vld [vmem:[%s5916_s4] sm:$0xff] }
 0x19b   :  { %2165 = vmatpush2.bf16.msra.mxu1 %v4753_v52  ;;  %2123 = vmatprep.subr.bf16.mxu0 %v4618_v53  ;;  %v5118_v52 = vld [vmem:[#allocation4 + $0xc4] ss:$16 sps:$4 sm:$0xff]   ;;  %v5128_v53 = vld [vmem:[#allocation4 + $0x2e0] ss:$16 sps:$4 sm:$0xff]  }
 0x19c   :  { %2166 = vmatprep.subr.bf16.mxu1 %v4746_v54  ;;  %v534_v54 = vrot.slane %v5736_v51, %v5693_v28 }
 0x19e   :  { %2124 = vmatpush2.bf16.msra.mxu0 %v4617_v59 }
 0x19f   :  { %2167 = vmatpush2.bf16.msra.mxu1 %v4745_v60  ;;  %2125 = vmatprep.subr.bf16.mxu0 %v4610_v61  ;;  %v5121_v61 = vld [vmem:[#allocation4 + $0xa4] ss:$16 sps:$4 sm:$0xff]  }
 0x1a0   :  { %2168 = vmatprep.subr.bf16.mxu1 %v4738_v62  ;;  %v5134_v62 = vld [vmem:[#allocation4 + $0x2c0] ss:$16 sps:$4 sm:$0xff]  }
 0x1a2   :  { %2126 = vmatpush2.bf16.msra.mxu0 %v4609_v6 }
 0x1a3   :  { %2169 = vmatpush2.bf16.msra.mxu1 %v4737_v2  ;;  %2127 = vmatprep.subr.bf16.mxu0 %v4602_v7  ;;  %v5140_v2 = vld [vmem:[#allocation4 + $0x2a0] ss:$16 sps:$4 sm:$0xff]  }
 0x1a4   :  { %2170 = vmatprep.subr.bf16.mxu1 %v4730_v8 }
 0x1a6   :  { %2128 = vmatpush2.bf16.msra.mxu0 %v4601_v13  ;;  %v5127_v13 = vld [vmem:[#allocation4 + $0x64] ss:$16 sps:$4 sm:$0xff]  }
 0x1a7   :  { %2171 = vmatpush2.bf16.msra.mxu1 %v4729_v14  ;;  %2129 = vmatprep.subr.bf16.mxu0 %v4594_v15  ;;  %v5146_v14 = vld [vmem:[#allocation4 + $0x280] ss:$16 sps:$4 sm:$0xff]  }
 0x1a8   :  { %2172 = vmatprep.subr.bf16.mxu1 %v4722_v16 }
 0x1aa   :  { %2130 = vmatpush2.bf16.msra.mxu0 %v4593_v21  ;;  %v5152_v21 = vld [vmem:[#allocation4 + $0x260] ss:$16 sps:$4 sm:$0xff]  }
 0x1ab   :  { %2173 = vmatpush2.bf16.msra.mxu1 %v4721_v22  ;;  %2131 = vmatprep.subr.bf16.mxu0 %v4586_v23  ;;  %v5160_v22 = vld [vmem:[#allocation4 + $0x244] ss:$16 sps:$4 sm:$0xff]   ;;  %v5131_v23 = vld [vmem:[#allocation4 + $0x40] ss:$16 sps:$4 sm:$0xff]  }
 0x1ac   :  { %2174 = vmatprep.subr.bf16.mxu1 %v4714_v24  ;;  %v5139_v24 = vld [vmem:[#allocation4 + $0x24] ss:$16 sps:$4 sm:$0xff]  }
 0x1ae   :  { %2132 = vmatpush2.bf16.msra.mxu0 %v4585_v34  ;;  %v5164_v34 = vld [vmem:[#allocation4 + $0x220] ss:$16 sps:$4 sm:$0xff]  }
 0x1af   :  { %2175 = vmatpush2.bf16.msra.mxu1 %v4713_v35  ;;  %2133 = vmatprep.subr.bf16.mxu0 %v4578_v36  ;;  %v5172_v35 = vld [vmem:[#allocation4 + $0x204] ss:$16 sps:$4 sm:$0xff]   ;;  %v5143_v36 = vld [vmem:[#allocation4] ss:$16 sps:$4 sm:$0xff]  }
 0x1b0   :  { %2176 = vmatprep.subr.bf16.mxu1 %v4706_v37  ;;  %v5151_v37 = vld [vmem:[#allocation4 + $0x1e4] ss:$16 sps:$4 sm:$0xff]  }
 0x1b2   :  { %2134 = vmatpush2.bf16.msra.mxu0 %v4577_v42  ;;  %v5176_v42 = vld [vmem:[#allocation4 + $0x3e0] ss:$16 sps:$4 sm:$0xff]  }
 0x1b3   :  { %2177 = vmatpush2.bf16.msra.mxu1 %v4705_v43  ;;  %2135 = vmatprep.subr.bf16.mxu0 %v4570_v44  ;;  %v5184_v43 = vld [vmem:[#allocation4 + $0x3c4] ss:$16 sps:$4 sm:$0xff]   ;;  %v5155_v44 = vld [vmem:[#allocation4 + $0x1c0] ss:$16 sps:$4 sm:$0xff]  }
 0x1b4   :  { %2178 = vmatprep.subr.bf16.mxu1 %v4698_v45  ;;  %v5163_v45 = vld [vmem:[#allocation4 + $0x1a4] ss:$16 sps:$4 sm:$0xff]  }
 0x1b6   :  { %2136 = vmatpush2.bf16.msra.mxu0 %v4569_v46  ;;  %v5182_v46 = vld [vmem:[#allocation4 + $0x3c0] ss:$16 sps:$4 sm:$0xff]  }
 0x1b7   :  { %2179 = vmatpush2.bf16.msra.mxu1 %v4697_v47  ;;  %3773 = vmatprep.subr.bf16.mxu0 %v5115_v48  ;;  %v5190_v47 = vld [vmem:[#allocation4 + $0x3a4] ss:$16 sps:$4 sm:$0xff]   ;;  %v5161_v48 = vld [vmem:[#allocation4 + $0x1a0] ss:$16 sps:$4 sm:$0xff]  }
 0x1b8   :  { %3816 = vmatprep.subr.bf16.mxu1 %v5130_v49  ;;  %v5169_v49 = vld [vmem:[#allocation4 + $0x184] ss:$16 sps:$4 sm:$0xff]  }
 0x1b9   :  { %2138 = vmatmul.mubr.bf16.vlgmr.msra.gmra.mxu0 %v5715_v3  ;;  %v5741_v56 = vpop.f32.mrf.mxu0  ;;  %v5743_v57 = vpop.f32.mrf.mxu1 }
 0x1ba   :  { %2181 = vmatmul.mubr.bf16.vlgmr.msra.gmra.mxu1 %v5717_v4  ;;  %3774 = vmatpush1.bf16.msra.mxu0 %v5113_v50  ;;  %v5124_v4 = vld [vmem:[#allocation4 + $0x84] ss:$16 sps:$4 sm:$0xff]   ;;  %v5188_v50 = vld [vmem:[#allocation4 + $0x3a0] ss:$16 sps:$4 sm:$0xff]  }
 0x1bb   :  { %v1883_v59 = vpop.f32.mrf.mxu0  ;;  %v1926_v60 = vpop.f32.mrf.mxu1  ;;  %3775 = vmatprep.subr.bf16.mxu0 %v5118_v52  ;;  %3817 = vmatpush1.bf16.msra.mxu1 %v5128_v53  ;;  %v5196_v52 = vld [vmem:[#allocation4 + $0x384] ss:$16 sps:$4 sm:$0xff]   ;;  %v5167_v53 = vld [vmem:[#allocation4 + $0x180] ss:$16 sps:$4 sm:$0xff]  }
 0x1bc   :  { %v1884_v1 = vadd.f32 %v1883_v59, %v534_v54  ;;  %3818 = vmatprep.subr.bf16.mxu1 %v5136_v55  ;;  %v5194_v55 = vld [vmem:[#allocation4 + $0x380] ss:$16 sps:$4 sm:$0xff]  }
 0x1bd   :  { %v5746_v0 = vpop.f32.mrf.mxu0  ;;  %v5748_v3 = vpop.f32.mrf.mxu1  ;;  %v5173_v59 = vld [vmem:[#allocation4 + $0x160] ss:$16 sps:$4 sm:$0xff]  }
 0x1be   :  { %3776 = vmatpush1.bf16.msra.mxu0 %v5116_v58  ;;  %v1927_v7 = vadd.f32 %v1926_v60, %v1884_v1  ;;  %v5199_v58 = vld [vmem:[#allocation4 + $0x364] ss:$16 sps:$4 sm:$0xff]   ;;  %v530_v1 = vrot.slane %v5736_v51, %v5699_v30 }
 0x1bf   :  { %v1887_v6 = vpop.f32.mrf.mxu0  ;;  %3777 = vmatprep.subr.bf16.mxu0 %v5121_v61  ;;  %3819 = vmatpush1.bf16.msra.mxu1 %v5134_v62  ;;  %v1930_v10 = vpop.f32.mrf.mxu1  ;;  %v5181_v60 = vld [vmem:[#allocation4 + $0x144] ss:$16 sps:$4 sm:$0xff]   ;;  %v5197_v61 = vld [vmem:[#allocation4 + $0x360] ss:$16 sps:$4 sm:$0xff]  }
 0x1c0   :  { %v1888_v8 = vadd.f32 %v1887_v6, %v534_v54  ;;  %3820 = vmatprep.subr.bf16.mxu1 %v5142_v63  ;;  %v2192_v15 = vmax.f32 %v1927_v7, 0.0  ;;  %v5175_v54 = vld [vmem:[#allocation4 + $0x164] ss:$16 sps:$4 sm:$0xff]   ;;  %v5179_v63 = vld [vmem:[#allocation4 + $0x140] ss:$16 sps:$4 sm:$0xff]   ;;  %v1882_v7 = vadd.f32 %v5741_v56, %v530_v1 }
 0x1c1   :  { %v5202_v62 = vld [vmem:[#allocation4 + $0x344] ss:$16 sps:$4 sm:$0xff]  }
 0x1c2   :  { %v1931_v11 = vadd.f32 %v1930_v10, %v1888_v8  ;;  %3778 = vmatpush1.bf16.msra.mxu0 %v5119_v5  ;;  %v1886_v5 = vadd.f32 %v5746_v0, %v530_v1  ;;  %v5187_v6 = vld [vmem:[#allocation4 + $0x124] ss:$16 sps:$4 sm:$0xff]   ;;  %v5185_v8 = vld [vmem:[#allocation4 + $0x120] ss:$16 sps:$4 sm:$0xff]   ;;  %v1925_v0 = vadd.f32 %v5743_v57, %v1882_v7  ;;  %v542_v57 = vrot.slane %v5736_v51, %v5696_v29 }
 0x1c3   :  { %3779 = vmatprep.subr.bf16.mxu0 %v5124_v4  ;;  %3821 = vmatpush1.bf16.msra.mxu1 %v5140_v2  ;;  %v5200_v4 = vld [vmem:[#allocation4 + $0x340] ss:$16 sps:$4 sm:$0xff]   ;;  %v5205_v2 = vld [vmem:[#allocation4 + $0x324] ss:$16 sps:$4 sm:$0xff]  }
 0x1c4   :  { %v2200_v16 = vmax.f32 %v1931_v11, 0.0  ;;  %3822 = vmatprep.subr.bf16.mxu1 %v5148_v9  ;;  %v1929_v9 = vadd.f32 %v5748_v3, %v1886_v5  ;;  %v5193_v10 = vld [vmem:[#allocation4 + $0x104] ss:$16 sps:$4 sm:$0xff]   ;;  %v5203_v11 = vld [vmem:[#allocation4 + $0x320] ss:$16 sps:$4 sm:$0xff]  }
 0x1c5   :  { %v5259_v56 = vld [vmem:[#allocation4 + $0x6e4] ss:$16 sps:$4 sm:$0xff]   ;;  %v5209_v3 = vld [vmem:[#allocation4 + $0x4e0] ss:$16 sps:$4 sm:$0xff]  }
 0x1c6   :  { %v5750_v18 = vpack.c.bf16 %v2200_v16, %v2192_v15  ;;  %3780 = vmatpush1.bf16.msra.mxu0 %v5122_v12  ;;  %v5208_v12 = vld [vmem:[#allocation4 + $0x304] ss:$16 sps:$4 sm:$0xff]   ;;  %v5206_v15 = vld [vmem:[#allocation4 + $0x300] ss:$16 sps:$4 sm:$0xff]  }
 0x1c7   :  { %3781 = vmatprep.subr.bf16.mxu0 %v5127_v13  ;;  %3823 = vmatpush1.bf16.msra.mxu1 %v5146_v14  ;;  %v5191_v13 = vld [vmem:[#allocation4 + $0x100] ss:$16 sps:$4 sm:$0xff]   ;;  %v2199_v14 = vmax.f32 %v1929_v9, 0.0  ;;  %v5211_v16 = vld [vmem:[#allocation4 + $0x4e4] ss:$16 sps:$4 sm:$0xff]  }
 0x1c8   :  { %3805 = vmatprep.mubr.bf16.mxu0 %v5750_v18  ;;  %3824 = vmatprep.subr.bf16.mxu1 %v5154_v17  ;;  %v2191_v17 = vmax.f32 %v1925_v0, 0.0  ;;  %v5263_v1 = vld [vmem:[#allocation4 + $0x6c0] ss:$16 sps:$4 sm:$0xff]   ;;  %v5271_v5 = vld [vmem:[#allocation4 + $0x6a4] ss:$16 sps:$4 sm:$0xff]  }
 0x1c9   :  { %v5277_v7 = vld [vmem:[#allocation4 + $0x684] ss:$16 sps:$4 sm:$0xff]   ;;  %v5275_v9 = vld [vmem:[#allocation4 + $0x680] ss:$16 sps:$4 sm:$0xff]  }
 0x1ca   :  { %3782 = vmatpush1.bf16.msra.mxu0 %v5125_v19  ;;  %v5759_v19 = vpack.c.bf16 %v2199_v14, %v2191_v17  ;;  %v5281_v0 = vld [vmem:[#allocation4 + $0x660] ss:$16 sps:$4 sm:$0xff]   ;;  %v5289_v14 = vld [vmem:[#allocation4 + $0x644] ss:$16 sps:$4 sm:$0xff]  }
 0x1cb   :  { %3783 = vmatprep.subr.bf16.mxu0 %v5133_v20  ;;  %3825 = vmatpush1.bf16.msra.mxu1 %v5152_v21  ;;  %v5214_v20 = vld [vmem:[#allocation4 + $0x4c4] ss:$16 sps:$4 sm:$0xff]   ;;  %v538_v21 = vrot.slane %v5736_v51, %v5702_v31 }
 0x1cc   :  { %3826 = vmatprep.subr.bf16.mxu1 %v5160_v22  ;;  %v5295_v17 = vld [vmem:[#allocation4 + $0x624] ss:$16 sps:$4 sm:$0xff]  }
 0x1ce   :  { %3784 = vmatpush1.bf16.msra.mxu0 %v5131_v23 }
 0x1cf   :  { %3785 = vmatprep.subr.bf16.mxu0 %v5139_v24  ;;  %3827 = vmatpush1.bf16.msra.mxu1 %v5158_v25  ;;  %v5212_v24 = vld [vmem:[#allocation4 + $0x4c0] ss:$16 sps:$4 sm:$0xff]  }
 0x1d0   :  { %3828 = vmatprep.subr.bf16.mxu1 %v5166_v26 }
 0x1d2   :  { %3786 = vmatpush1.bf16.msra.mxu0 %v5137_v32  ;;  %v5217_v32 = vld [vmem:[#allocation4 + $0x4a4] ss:$16 sps:$4 sm:$0xff]  }
 0x1d3   :  { %3787 = vmatprep.subr.bf16.mxu0 %v5145_v33  ;;  %3829 = vmatpush1.bf16.msra.mxu1 %v5164_v34 }
 0x1d4   :  { %3830 = vmatprep.subr.bf16.mxu1 %v5172_v35 }
 0x1d6   :  { %3788 = vmatpush1.bf16.msra.mxu0 %v5143_v36 }
 0x1d7   :  { %3789 = vmatprep.subr.bf16.mxu0 %v5151_v37  ;;  %3831 = vmatpush1.bf16.msra.mxu1 %v5170_v38  ;;  %v5215_v38 = vld [vmem:[#allocation4 + $0x4a0] ss:$16 sps:$4 sm:$0xff]  }
 0x1d8   :  { %3832 = vmatprep.subr.bf16.mxu1 %v5178_v39 }
 0x1da   :  { %3790 = vmatpush2.bf16.msra.mxu0 %v5149_v40  ;;  %v5220_v40 = vld [vmem:[#allocation4 + $0x484] ss:$16 sps:$4 sm:$0xff]  }
 0x1db   :  { %3791 = vmatprep.subr.bf16.mxu0 %v5157_v41  ;;  %3833 = vmatpush2.bf16.msra.mxu1 %v5176_v42 }
 0x1dc   :  { %3834 = vmatprep.subr.bf16.mxu1 %v5184_v43 }
 0x1de   :  { %3792 = vmatpush2.bf16.msra.mxu0 %v5155_v44 }
 0x1df   :  { %3793 = vmatprep.subr.bf16.mxu0 %v5163_v45  ;;  %3835 = vmatpush2.bf16.msra.mxu1 %v5182_v46 }
 0x1e0   :  { %3836 = vmatprep.subr.bf16.mxu1 %v5190_v47  ;;  %v5218_v47 = vld [vmem:[#allocation4 + $0x480] ss:$16 sps:$4 sm:$0xff]  }
 0x1e2   :  { %3794 = vmatpush2.bf16.msra.mxu0 %v5161_v48 }
 0x1e3   :  { %3795 = vmatprep.subr.bf16.mxu0 %v5169_v49  ;;  %3837 = vmatpush2.bf16.msra.mxu1 %v5188_v50  ;;  %v5223_v49 = vld [vmem:[#allocation4 + $0x464] ss:$16 sps:$4 sm:$0xff]  }
 0x1e4   :  { %3838 = vmatprep.subr.bf16.mxu1 %v5196_v52 }
 0x1e6   :  { %3796 = vmatpush2.bf16.msra.mxu0 %v5167_v53 }
 0x1e7   :  { %3797 = vmatprep.subr.bf16.mxu0 %v5175_v54  ;;  %3839 = vmatpush2.bf16.msra.mxu1 %v5194_v55  ;;  %v5221_v55 = vld [vmem:[#allocation4 + $0x460] ss:$16 sps:$4 sm:$0xff]  }
 0x1e8   :  { %3840 = vmatprep.subr.bf16.mxu1 %v5199_v58  ;;  %v5257_v58 = vld [vmem:[#allocation4 + $0x6e0] ss:$16 sps:$4 sm:$0xff]  }
 0x1ea   :  { %3798 = vmatpush2.bf16.msra.mxu0 %v5173_v59 }
 0x1eb   :  { %3799 = vmatprep.subr.bf16.mxu0 %v5181_v60  ;;  %3841 = vmatpush2.bf16.msra.mxu1 %v5197_v61  ;;  %v5226_v60 = vld [vmem:[#allocation4 + $0x444] ss:$16 sps:$4 sm:$0xff]  }
 0x1ec   :  { %3842 = vmatprep.subr.bf16.mxu1 %v5202_v62  ;;  %v5265_v61 = vld [vmem:[#allocation4 + $0x6c4] ss:$16 sps:$4 sm:$0xff]   ;;  %v5224_v62 = vld [vmem:[#allocation4 + $0x440] ss:$16 sps:$4 sm:$0xff]  }
 0x1ee   :  { %3800 = vmatpush2.bf16.msra.mxu0 %v5179_v63  ;;  %v5229_v63 = vld [vmem:[#allocation4 + $0x424] ss:$16 sps:$4 sm:$0xff]  }
 0x1ef   :  { %3801 = vmatprep.subr.bf16.mxu0 %v5187_v6  ;;  %3843 = vmatpush2.bf16.msra.mxu1 %v5200_v4  ;;  %v5227_v6 = vld [vmem:[#allocation4 + $0x420] ss:$16 sps:$4 sm:$0xff]  }
 0x1f0   :  { %3844 = vmatprep.subr.bf16.mxu1 %v5205_v2  ;;  %v5269_v4 = vld [vmem:[#allocation4 + $0x6a0] ss:$16 sps:$4 sm:$0xff]   ;;  %v5232_v2 = vld [vmem:[#allocation4 + $0x404] ss:$16 sps:$4 sm:$0xff]  }
 0x1f2   :  { %3802 = vmatpush2.bf16.msra.mxu0 %v5185_v8  ;;  %v5230_v8 = vld [vmem:[#allocation4 + $0x400] ss:$16 sps:$4 sm:$0xff]  }
 0x1f3   :  { %3803 = vmatprep.subr.bf16.mxu0 %v5193_v10  ;;  %3845 = vmatpush2.bf16.msra.mxu1 %v5203_v11  ;;  %v5235_v10 = vld [vmem:[#allocation4 + $0x5e4] ss:$16 sps:$4 sm:$0xff]  }
 0x1f4   :  { %3846 = vmatprep.subr.bf16.mxu1 %v5208_v12  ;;  %v5283_v11 = vld [vmem:[#allocation4 + $0x664] ss:$16 sps:$4 sm:$0xff]   ;;  %v5233_v12 = vld [vmem:[#allocation4 + $0x5e0] ss:$16 sps:$4 sm:$0xff]  }
 0x1f6   :  { %3804 = vmatpush2.bf16.msra.mxu0 %v5191_v13  ;;  %v5238_v13 = vld [vmem:[#allocation4 + $0x5c4] ss:$16 sps:$4 sm:$0xff]  }
 0x1f7   :  { %3847 = vmatpush2.bf16.msra.mxu1 %v5206_v15  ;;  %3859 = vmatprep.subr.bf16.mxu0 %v5211_v16  ;;  %v5236_v15 = vld [vmem:[#allocation4 + $0x5c0] ss:$16 sps:$4 sm:$0xff]  }
 0x1f8   :  { %3902 = vmatprep.subr.bf16.mxu1 %v5259_v56  ;;  %v5287_v16 = vld [vmem:[#allocation4 + $0x640] ss:$16 sps:$4 sm:$0xff]   ;;  %v5241_v56 = vld [vmem:[#allocation4 + $0x5a4] ss:$16 sps:$4 sm:$0xff]  }
 0x1f9   :  { %v1967_v22 = vpop.f32.mrf.mxu0  ;;  %v2010_v23 = vpop.f32.mrf.mxu1  ;;  %3806 = vmatmul.mubr.bf16.vlgmr.msra.gmra.mxu0 %v5759_v19 }
 0x1fa   :  { %3860 = vmatpush1.bf16.msra.mxu0 %v5209_v3  ;;  %v1968_v34 = vadd.f32 %v1967_v22, %v538_v21  ;;  %v5239_v3 = vld [vmem:[#allocation4 + $0x5a0] ss:$16 sps:$4 sm:$0xff]  }
 0x1fb   :  { %v1969_v25 = vpop.f32.mrf.mxu0  ;;  %v2012_v26 = vpop.f32.mrf.mxu1  ;;  %3861 = vmatprep.subr.bf16.mxu0 %v5214_v20  ;;  %v5293_v20 = vld [vmem:[#allocation4 + $0x620] ss:$16 sps:$4 sm:$0xff]  }
 0x1fc   :  { %v1970_v33 = vadd.f32 %v1969_v25, %v542_v57  ;;  %v2011_v44 = vadd.f32 %v2010_v23, %v1968_v34  ;;  %v5242_v22 = vld [vmem:[#allocation4 + $0x580] ss:$16 sps:$4 sm:$0xff]   ;;  %v5307_v25 = vld [vmem:[#allocation4 + $0x7e4] ss:$16 sps:$4 sm:$0xff]  }
 0x1fd   :  { %v1971_v35 = vpop.f32.mrf.mxu0  ;;  %v2014_v36 = vpop.f32.mrf.mxu1  ;;  %v5299_v23 = vld [vmem:[#allocation4 + $0x600] ss:$16 sps:$4 sm:$0xff]   ;;  %v5313_v34 = vld [vmem:[#allocation4 + $0x7c4] ss:$16 sps:$4 sm:$0xff]  }
 0x1fe   :  { %v1972_v37 = vadd.f32 %v1971_v35, %v538_v21  ;;  %3862 = vmatpush1.bf16.msra.mxu0 %v5212_v24  ;;  %v2013_v41 = vadd.f32 %v2012_v26, %v1970_v33  ;;  %v2193_v53 = vmax.f32 %v2011_v44, 0.0  ;;  %v5301_v21 = vld [vmem:[#allocation4 + $0x604] ss:$16 sps:$4 sm:$0xff]   ;;  %v5245_v26 = vld [vmem:[#allocation4 + $0x560] ss:$16 sps:$4 sm:$0xff]  }
 0x1ff   :  { %v1973_v39 = vpop.f32.mrf.mxu0  ;;  %3863 = vmatprep.subr.bf16.mxu0 %v5217_v32  ;;  %v2016_v45 = vpop.f32.mrf.mxu1  ;;  %v5247_v24 = vld [vmem:[#allocation4 + $0x564] ss:$16 sps:$4 sm:$0xff]   ;;  %v5305_v32 = vld [vmem:[#allocation4 + $0x7e0] ss:$16 sps:$4 sm:$0xff]  }
 0x200   :  { %v2015_v42 = vadd.f32 %v2014_v36, %v1972_v37  ;;  %v1974_v43 = vadd.f32 %v1973_v39, %v542_v57  ;;  %v2194_v50 = vmax.f32 %v2013_v41, 0.0  ;;  %v5244_v57 = vld [vmem:[#allocation4 + $0x584] ss:$16 sps:$4 sm:$0xff]   ;;  %v5248_v35 = vld [vmem:[#allocation4 + $0x540] ss:$16 sps:$4 sm:$0xff]  }
 0x201   :  { %v5250_v33 = vld [vmem:[#allocation4 + $0x544] ss:$16 sps:$4 sm:$0xff]   ;;  %v5311_v36 = vld [vmem:[#allocation4 + $0x7c0] ss:$16 sps:$4 sm:$0xff]  }
 0x202   :  { %v2017_v46 = vadd.f32 %v2016_v45, %v1974_v43  ;;  %3864 = vmatpush1.bf16.msra.mxu0 %v5215_v38  ;;  %v2201_v48 = vmax.f32 %v2015_v42, 0.0  ;;  %v5253_v37 = vld [vmem:[#allocation4 + $0x524] ss:$16 sps:$4 sm:$0xff]   ;;  %v5251_v39 = vld [vmem:[#allocation4 + $0x520] ss:$16 sps:$4 sm:$0xff]  }
 0x203   :  { %3865 = vmatprep.subr.bf16.mxu0 %v5220_v40  ;;  %v5319_v38 = vld [vmem:[#allocation4 + $0x7a4] ss:$16 sps:$4 sm:$0xff]   ;;  %v5317_v40 = vld [vmem:[#allocation4 + $0x7a0] ss:$16 sps:$4 sm:$0xff]   ;;  %v5262_v45 = vld [vmem:[#allocation4 + $0xec] ss:$16 sps:$4 sm:$0xff]  }
 0x204   :  { %v2202_v52 = vmax.f32 %v2017_v46, 0.0  ;;  %v5768_v59 = vpack.c.bf16 %v2201_v48, %v2193_v53  ;;  %v5256_v41 = vld [vmem:[#allocation4 + $0x504] ss:$16 sps:$4 sm:$0xff]   ;;  %v5254_v43 = vld [vmem:[#allocation4 + $0x500] ss:$16 sps:$4 sm:$0xff]   ;;  %v545_v48 = vsub.s32 4, %v5690_v27 }
 0x205   :  { %v5325_v42 = vld [vmem:[#allocation4 + $0x784] ss:$16 sps:$4 sm:$0xff]   ;;  %v5323_v44 = vld [vmem:[#allocation4 + $0x780] ss:$16 sps:$4 sm:$0xff]  }
 0x206   :  { %v5766_v54 = vpack.c.bf16 %v2202_v52, %v2194_v50  ;;  %3866 = vmatpush1.bf16.msra.mxu0 %v5218_v47  ;;  %v5331_v46 = vld [vmem:[#allocation4 + $0x764] ss:$16 sps:$4 sm:$0xff]   ;;  %v549_v47 = vsub.s32 5, %v5690_v27  ;;  %v546_v53 = vrot.slane %v5736_v51, %v545_v48  ;;  %v5326_v48 = vld [vmem:[#allocation4 + $0x188] ss:$16 sps:$4 sm:$0xff]  }
 0x207   :  { %3867 = vmatprep.subr.bf16.mxu0 %v5223_v49  ;;  %v5329_v49 = vld [vmem:[#allocation4 + $0x760] ss:$16 sps:$4 sm:$0xff]   ;;  %v5337_v50 = vld [vmem:[#allocation4 + $0x744] ss:$16 sps:$4 sm:$0xff]  }
 0x208   :  { %3848 = vmatprep.mubr.bf16.mxu1 %v5766_v54  ;;  %v550_v52 = vrot.slane %v5736_v51, %v549_v47  ;;  %v5328_v47 = vld [vmem:[#allocation4 + $0x18c] ss:$16 sps:$4 sm:$0xff]  }
 0x209   :  { %3849 = vmatmul.mubr.bf16.vlgmr.msra.gmra.mxu1 %v5768_v59 }
 0x20a   :  { %3868 = vmatpush1.bf16.msra.mxu0 %v5221_v55  ;;  %3903 = vmatpush1.bf16.msra.mxu1 %v5257_v58 }
 0x20b   :  { %3869 = vmatprep.subr.bf16.mxu0 %v5226_v60  ;;  %3904 = vmatprep.subr.bf16.mxu1 %v5265_v61  ;;  %v5335_v60 = vld [vmem:[#allocation4 + $0x740] ss:$16 sps:$4 sm:$0xff]  }
 0x20e   :  { %3870 = vmatpush1.bf16.msra.mxu0 %v5224_v62  ;;  %3905 = vmatpush1.bf16.msra.mxu1 %v5263_v1  ;;  %v5343_v62 = vld [vmem:[#allocation4 + $0x724] ss:$16 sps:$4 sm:$0xff]  }
 0x20f   :  { %3871 = vmatprep.subr.bf16.mxu0 %v5229_v63  ;;  %3906 = vmatprep.subr.bf16.mxu1 %v5271_v5 }
 0x212   :  { %3872 = vmatpush1.bf16.msra.mxu0 %v5227_v6  ;;  %3907 = vmatpush1.bf16.msra.mxu1 %v5269_v4 }
 0x213   :  { %3873 = vmatprep.subr.bf16.mxu0 %v5232_v2  ;;  %3908 = vmatprep.subr.bf16.mxu1 %v5277_v7  ;;  %v5341_v7 = vld [vmem:[#allocation4 + $0x720] ss:$16 sps:$4 sm:$0xff]  }
 0x216   :  { %3874 = vmatpush1.bf16.msra.mxu0 %v5230_v8  ;;  %3909 = vmatpush1.bf16.msra.mxu1 %v5275_v9  ;;  %v5349_v9 = vld [vmem:[#allocation4 + $0x704] ss:$16 sps:$4 sm:$0xff]  }
 0x217   :  { %3875 = vmatprep.subr.bf16.mxu0 %v5235_v10  ;;  %3910 = vmatprep.subr.bf16.mxu1 %v5283_v11 }
 0x21a   :  { %3876 = vmatpush2.bf16.msra.mxu0 %v5233_v12  ;;  %3911 = vmatpush1.bf16.msra.mxu1 %v5281_v0 }
 0x21b   :  { %3877 = vmatprep.subr.bf16.mxu0 %v5238_v13  ;;  %3912 = vmatprep.subr.bf16.mxu1 %v5289_v14 }
 0x21e   :  { %3878 = vmatpush2.bf16.msra.mxu0 %v5236_v15  ;;  %3913 = vmatpush1.bf16.msra.mxu1 %v5287_v16  ;;  %v5347_v15 = vld [vmem:[#allocation4 + $0x700] ss:$16 sps:$4 sm:$0xff]  }
 0x21f   :  { %3879 = vmatprep.subr.bf16.mxu0 %v5241_v56  ;;  %3914 = vmatprep.subr.bf16.mxu1 %v5295_v17  ;;  %v5355_v56 = vld [vmem:[#allocation4 + $0x2ec] ss:$16 sps:$4 sm:$0xff]  }
 0x222   :  { %3880 = vmatpush2.bf16.msra.mxu0 %v5239_v3  ;;  %3915 = vmatpush1.bf16.msra.mxu1 %v5293_v20 }
 0x223   :  { %3881 = vmatprep.subr.bf16.mxu0 %v5244_v57  ;;  %3916 = vmatprep.subr.bf16.mxu1 %v5301_v21  ;;  %v5260_v21 = vld [vmem:[#allocation4 + $0xe8] ss:$16 sps:$4 sm:$0xff]  }
 0x226   :  { %3882 = vmatpush2.bf16.msra.mxu0 %v5242_v22  ;;  %3917 = vmatpush1.bf16.msra.mxu1 %v5299_v23  ;;  %v5268_v23 = vld [vmem:[#allocation4 + $0xcc] ss:$16 sps:$4 sm:$0xff]  }
 0x227   :  { %3883 = vmatprep.subr.bf16.mxu0 %v5247_v24  ;;  %3918 = vmatprep.subr.bf16.mxu1 %v5307_v25  ;;  %v5266_v24 = vld [vmem:[#allocation4 + $0xc8] ss:$16 sps:$4 sm:$0xff]   ;;  %v5274_v25 = vld [vmem:[#allocation4 + $0xac] ss:$16 sps:$4 sm:$0xff]  }
 0x22a   :  { %3884 = vmatpush2.bf16.msra.mxu0 %v5245_v26  ;;  %3919 = vmatpush2.bf16.msra.mxu1 %v5305_v32  ;;  %v5272_v26 = vld [vmem:[#allocation4 + $0xa8] ss:$16 sps:$4 sm:$0xff]   ;;  %v5280_v32 = vld [vmem:[#allocation4 + $0x8c] ss:$16 sps:$4 sm:$0xff]  }
 0x22b   :  { %3885 = vmatprep.subr.bf16.mxu0 %v5250_v33  ;;  %3920 = vmatprep.subr.bf16.mxu1 %v5313_v34  ;;  %v5278_v33 = vld [vmem:[#allocation4 + $0x88] ss:$16 sps:$4 sm:$0xff]   ;;  %v5286_v34 = vld [vmem:[#allocation4 + $0x6c] ss:$16 sps:$4 sm:$0xff]  }
 0x22e   :  { %3886 = vmatpush2.bf16.msra.mxu0 %v5248_v35  ;;  %3921 = vmatpush2.bf16.msra.mxu1 %v5311_v36  ;;  %v5284_v35 = vld [vmem:[#allocation4 + $0x68] ss:$16 sps:$4 sm:$0xff]   ;;  %v5292_v36 = vld [vmem:[#allocation4 + $0x4c] ss:$16 sps:$4 sm:$0xff]  }
 0x22f   :  { %3887 = vmatprep.subr.bf16.mxu0 %v5253_v37  ;;  %3922 = vmatprep.subr.bf16.mxu1 %v5319_v38  ;;  %v5290_v37 = vld [vmem:[#allocation4 + $0x48] ss:$16 sps:$4 sm:$0xff]   ;;  %v5298_v38 = vld [vmem:[#allocation4 + $0x2c] ss:$16 sps:$4 sm:$0xff]  }
 0x232   :  { %3888 = vmatpush2.bf16.msra.mxu0 %v5251_v39  ;;  %3923 = vmatpush2.bf16.msra.mxu1 %v5317_v40  ;;  %v5304_v39 = vld [vmem:[#allocation4 + $0xc] ss:$16 sps:$4 sm:$0xff]   ;;  %v5302_v40 = vld [vmem:[#allocation4 + $0x8] ss:$16 sps:$4 sm:$0xff]  }
 0x233   :  { %3889 = vmatprep.subr.bf16.mxu0 %v5256_v41  ;;  %3924 = vmatprep.subr.bf16.mxu1 %v5325_v42  ;;  %v5310_v41 = vld [vmem:[#allocation4 + $0x1ec] ss:$16 sps:$4 sm:$0xff]   ;;  %v5308_v42 = vld [vmem:[#allocation4 + $0x1e8] ss:$16 sps:$4 sm:$0xff]  }
 0x236   :  { %3890 = vmatpush2.bf16.msra.mxu0 %v5254_v43  ;;  %3925 = vmatpush2.bf16.msra.mxu1 %v5323_v44  ;;  %v5316_v43 = vld [vmem:[#allocation4 + $0x1cc] ss:$16 sps:$4 sm:$0xff]   ;;  %v5314_v44 = vld [vmem:[#allocation4 + $0x1c8] ss:$16 sps:$4 sm:$0xff]  }
 0x237   :  { %3945 = vmatprep.subr.bf16.mxu0 %v5262_v45  ;;  %3926 = vmatprep.subr.bf16.mxu1 %v5331_v46  ;;  %v5322_v45 = vld [vmem:[#allocation4 + $0x1ac] ss:$16 sps:$4 sm:$0xff]   ;;  %v5320_v46 = vld [vmem:[#allocation4 + $0x1a8] ss:$16 sps:$4 sm:$0xff]  }
 0x239   :  { %v2053_v55 = vpop.f32.mrf.mxu0 }
 0x23a   :  { %v2096_v58 = vpop.f32.mrf.mxu1  ;;  %3927 = vmatpush2.bf16.msra.mxu1 %v5329_v49  ;;  %v2054_v5 = vadd.f32 %v2053_v55, %v546_v53  ;;  %v5334_v49 = vld [vmem:[#allocation4 + $0x16c] ss:$16 sps:$4 sm:$0xff]  }
 0x23b   :  { %v2055_v61 = vpop.f32.mrf.mxu0  ;;  %3928 = vmatprep.subr.bf16.mxu1 %v5337_v50  ;;  %v557_v50 = vsub.s32 7, %v5690_v27  ;;  %v5340_v55 = vld [vmem:[#allocation4 + $0x14c] ss:$16 sps:$4 sm:$0xff]  }
 0x23c   :  { %v2056_v1 = vadd.f32 %v2055_v61, %v550_v52  ;;  %v2098_v63 = vpop.f32.mrf.mxu1  ;;  %v2097_v0 = vadd.f32 %v2096_v58, %v2054_v5  ;;  %v5346_v5 = vld [vmem:[#allocation4 + $0x12c] ss:$16 sps:$4 sm:$0xff]  }
 0x23d   :  { %v2057_v6 = vpop.f32.mrf.mxu0  ;;  %v558_v58 = vrot.slane %v5736_v51, %v557_v50  ;;  %v5389_v50 = vld [vmem:[#allocation4 + $0x228] ss:$16 sps:$4 sm:$0xff]  }
 0x23e   :  { %v2058_v4 = vadd.f32 %v2057_v6, %v546_v53  ;;  %v2100_v2 = vpop.f32.mrf.mxu1  ;;  %3929 = vmatpush2.bf16.msra.mxu1 %v5335_v60  ;;  %v2099_v10 = vadd.f32 %v2098_v63, %v2056_v1  ;;  %v2195_v20 = vmax.f32 %v2097_v0, 0.0  ;;  %v5332_v53 = vld [vmem:[#allocation4 + $0x168] ss:$16 sps:$4 sm:$0xff]  }
 0x23f   :  { %v2059_v8 = vpop.f32.mrf.mxu0  ;;  %3930 = vmatprep.subr.bf16.mxu1 %v5343_v62  ;;  %v5338_v1 = vld [vmem:[#allocation4 + $0x148] ss:$16 sps:$4 sm:$0xff]  }
 0x240   :  { %v2101_v11 = vadd.f32 %v2100_v2, %v2058_v4  ;;  %v2060_v12 = vadd.f32 %v2059_v8, %v550_v52  ;;  %v2102_v13 = vpop.f32.mrf.mxu1  ;;  %v2196_v17 = vmax.f32 %v2099_v10, 0.0  ;;  %v553_v52 = vsub.s32 6, %v5690_v27 }
 0x242   :  { %v2103_v14 = vadd.f32 %v2102_v13, %v2060_v12  ;;  %3931 = vmatpush2.bf16.msra.mxu1 %v5341_v7  ;;  %v2203_v16 = vmax.f32 %v2101_v11, 0.0  ;;  %v554_v60 = vrot.slane %v5736_v51, %v553_v52  ;;  %v5352_v11 = vld [vmem:[#allocation4 + $0x10c] ss:$16 sps:$4 sm:$0xff]   ;;  %v5392_v52 = vld [vmem:[#allocation4 + $0x428] ss:$16 sps:$4 sm:$0xff]  }
 0x243   :  { %3932 = vmatprep.subr.bf16.mxu1 %v5349_v9  ;;  %v5344_v9 = vld [vmem:[#allocation4 + $0x128] ss:$16 sps:$4 sm:$0xff]  }
 0x244   :  { %v2204_v3 = vmax.f32 %v2103_v14, 0.0  ;;  %v5778_v22 = vpack.c.bf16 %v2203_v16, %v2195_v20  ;;  %v5350_v16 = vld [vmem:[#allocation4 + $0x108] ss:$16 sps:$4 sm:$0xff]  }
 0x246   :  { %v5776_v57 = vpack.c.bf16 %v2204_v3, %v2196_v17  ;;  %3933 = vmatpush2.bf16.msra.mxu1 %v5347_v15  ;;  %v5358_v17 = vld [vmem:[#allocation4 + $0x4ec] ss:$16 sps:$4 sm:$0xff]  }
 0x247   :  { %3988 = vmatprep.subr.bf16.mxu1 %v5355_v56 }
 0x248   :  { %3891 = vmatprep.mubr.bf16.mxu0 %v5776_v57 }
 0x249   :  { %3892 = vmatmul.mubr.bf16.vlgmr.msra.gmra.mxu0 %v5778_v22 }
 0x24a   :  { %3946 = vmatpush1.bf16.msra.mxu0 %v5260_v21  ;;  %3977 = vmatprep.mubr.bf16.mxu0 %v5750_v18  ;;  %v5296_v18 = vld [vmem:[#allocation4 + $0x28] ss:$16 sps:$4 sm:$0xff]  }
 0x24b   :  { %3947 = vmatprep.subr.bf16.mxu0 %v5268_v23 }
 0x24e   :  { %3948 = vmatpush1.bf16.msra.mxu0 %v5266_v24  ;;  %v5353_v24 = vld [vmem:[#allocation4 + $0x2e8] ss:$16 sps:$4 sm:$0xff]  }
 0x24f   :  { %3949 = vmatprep.subr.bf16.mxu0 %v5274_v25  ;;  %v5356_v25 = vld [vmem:[#allocation4 + $0x4e8] ss:$16 sps:$4 sm:$0xff]  }
 0x252   :  { %3950 = vmatpush1.bf16.msra.mxu0 %v5272_v26 }
 0x253   :  { %3951 = vmatprep.subr.bf16.mxu0 %v5280_v32  ;;  %v5361_v32 = vld [vmem:[#allocation4 + $0x2cc] ss:$16 sps:$4 sm:$0xff]  }
 0x256   :  { %3952 = vmatpush1.bf16.msra.mxu0 %v5278_v33  ;;  %v5364_v33 = vld [vmem:[#allocation4 + $0x4cc] ss:$16 sps:$4 sm:$0xff]  }
 0x257   :  { %3953 = vmatprep.subr.bf16.mxu0 %v5286_v34  ;;  %v5359_v34 = vld [vmem:[#allocation4 + $0x2c8] ss:$16 sps:$4 sm:$0xff]  }
 0x25a   :  { %3954 = vmatpush1.bf16.msra.mxu0 %v5284_v35  ;;  %v5362_v35 = vld [vmem:[#allocation4 + $0x4c8] ss:$16 sps:$4 sm:$0xff]  }
 0x25b   :  { %3955 = vmatprep.subr.bf16.mxu0 %v5292_v36  ;;  %v5367_v36 = vld [vmem:[#allocation4 + $0x2ac] ss:$16 sps:$4 sm:$0xff]  }
 0x25e   :  { %3956 = vmatpush1.bf16.msra.mxu0 %v5290_v37  ;;  %v5370_v37 = vld [vmem:[#allocation4 + $0x4ac] ss:$16 sps:$4 sm:$0xff]  }
 0x25f   :  { %3957 = vmatprep.subr.bf16.mxu0 %v5298_v38  ;;  %v5365_v38 = vld [vmem:[#allocation4 + $0x2a8] ss:$16 sps:$4 sm:$0xff]  }
 0x262   :  { %3958 = vmatpush1.bf16.msra.mxu0 %v5296_v18  ;;  %v5368_v18 = vld [vmem:[#allocation4 + $0x4a8] ss:$16 sps:$4 sm:$0xff]  }
 0x263   :  { %3959 = vmatprep.subr.bf16.mxu0 %v5304_v39  ;;  %v5376_v39 = vld [vmem:[#allocation4 + $0x48c] ss:$16 sps:$4 sm:$0xff]  }
 0x266   :  { %3960 = vmatpush1.bf16.msra.mxu0 %v5302_v40  ;;  %v5371_v40 = vld [vmem:[#allocation4 + $0x288] ss:$16 sps:$4 sm:$0xff]  }
 0x267   :  { %3961 = vmatprep.subr.bf16.mxu0 %v5310_v41  ;;  %v5374_v41 = vld [vmem:[#allocation4 + $0x488] ss:$16 sps:$4 sm:$0xff]  }
 0x26a   :  { %3962 = vmatpush2.bf16.msra.mxu0 %v5308_v42  ;;  %v5377_v42 = vld [vmem:[#allocation4 + $0x268] ss:$16 sps:$4 sm:$0xff]  }
 0x26b   :  { %3963 = vmatprep.subr.bf16.mxu0 %v5316_v43  ;;  %v5380_v43 = vld [vmem:[#allocation4 + $0x468] ss:$16 sps:$4 sm:$0xff]  }
 0x26e   :  { %3964 = vmatpush2.bf16.msra.mxu0 %v5314_v44  ;;  %v5385_v44 = vld [vmem:[#allocation4 + $0x24c] ss:$16 sps:$4 sm:$0xff]  }
 0x26f   :  { %3965 = vmatprep.subr.bf16.mxu0 %v5322_v45  ;;  %v5388_v45 = vld [vmem:[#allocation4 + $0x44c] ss:$16 sps:$4 sm:$0xff]  }
 0x272   :  { %3966 = vmatpush2.bf16.msra.mxu0 %v5320_v46  ;;  %v5383_v46 = vld [vmem:[#allocation4 + $0x248] ss:$16 sps:$4 sm:$0xff]  }
 0x273   :  { %3967 = vmatprep.subr.bf16.mxu0 %v5328_v47  ;;  %v5386_v47 = vld [vmem:[#allocation4 + $0x448] ss:$16 sps:$4 sm:$0xff]  }
 0x276   :  { %3968 = vmatpush2.bf16.msra.mxu0 %v5326_v48  ;;  %v5391_v48 = vld [vmem:[#allocation4 + $0x22c] ss:$16 sps:$4 sm:$0xff]  }
 0x277   :  { %3969 = vmatprep.subr.bf16.mxu0 %v5334_v49  ;;  %v5394_v49 = vld [vmem:[#allocation4 + $0x42c] ss:$16 sps:$4 sm:$0xff]  }
 0x279   :  { %v2139_v61 = vpop.f32.mrf.mxu0 }
 0x27a   :  { %v2182_v62 = vpop.f32.mrf.mxu1  ;;  %3970 = vmatpush2.bf16.msra.mxu0 %v5332_v53  ;;  %v2140_v2 = vadd.f32 %v2139_v61, %v554_v60  ;;  %v5397_v53 = vld [vmem:[#allocation4 + $0x20c] ss:$16 sps:$4 sm:$0xff]  }
 0x27b   :  { %v2141_v63 = vpop.f32.mrf.mxu0  ;;  %3971 = vmatprep.subr.bf16.mxu0 %v5340_v55  ;;  %v5400_v55 = vld [vmem:[#allocation4 + $0x40c] ss:$16 sps:$4 sm:$0xff]  }
 0x27c   :  { %v2142_v6 = vadd.f32 %v2141_v63, %v558_v58  ;;  %v2184_v4 = vpop.f32.mrf.mxu1  ;;  %v2183_v13 = vadd.f32 %v2182_v62, %v2140_v2  ;;  %v5403_v61 = vld [vmem:[#allocation4 + $0x3ec] ss:$16 sps:$4 sm:$0xff]   ;;  %v5404_v63 = vld [vmem:[#allocation4 + $0x5e8] ss:$16 sps:$4 sm:$0xff]  }
 0x27d   :  { %v2143_v7 = vpop.f32.mrf.mxu0  ;;  %v5406_v62 = vld [vmem:[#allocation4 + $0x5ec] ss:$16 sps:$4 sm:$0xff]   ;;  %v5410_v2 = vld [vmem:[#allocation4 + $0x5c8] ss:$16 sps:$4 sm:$0xff]  }
 0x27e   :  { %v2144_v27 = vadd.f32 %v2143_v7, %v554_v60  ;;  %v2186_v8 = vpop.f32.mrf.mxu1  ;;  %3972 = vmatpush2.bf16.msra.mxu0 %v5338_v1  ;;  %v2185_v12 = vadd.f32 %v2184_v4, %v2142_v6  ;;  %v2197_v21 = vmax.f32 %v2183_v13, 0.0  ;;  %v5398_v60 = vld [vmem:[#allocation4 + $0x408] ss:$16 sps:$4 sm:$0xff]   ;;  %v5412_v6 = vld [vmem:[#allocation4 + $0x5cc] ss:$16 sps:$4 sm:$0xff]  }
 0x27f   :  { %v2145_v10 = vpop.f32.mrf.mxu0  ;;  %3973 = vmatprep.subr.bf16.mxu0 %v5346_v5  ;;  %v5401_v1 = vld [vmem:[#allocation4 + $0x3e8] ss:$16 sps:$4 sm:$0xff]   ;;  %v5409_v5 = vld [vmem:[#allocation4 + $0x3cc] ss:$16 sps:$4 sm:$0xff]  }
 0x280   :  { %v2187_v51 = vadd.f32 %v2186_v8, %v2144_v27  ;;  %v2146_v0 = vadd.f32 %v2145_v10, %v558_v58  ;;  %v2188_v14 = vpop.f32.mrf.mxu1  ;;  %v2198_v3 = vmax.f32 %v2185_v12, 0.0  ;;  %v5395_v58 = vld [vmem:[#allocation4 + $0x208] ss:$16 sps:$4 sm:$0xff]   ;;  %v5415_v7 = vld [vmem:[#allocation4 + $0x3ac] ss:$16 sps:$4 sm:$0xff]  }
 0x281   :  { %v5407_v4 = vld [vmem:[#allocation4 + $0x3c8] ss:$16 sps:$4 sm:$0xff]   ;;  %v5418_v27 = vld [vmem:[#allocation4 + $0x5ac] ss:$16 sps:$4 sm:$0xff]  }
 0x282   :  { %v2189_v15 = vadd.f32 %v2188_v14, %v2146_v0  ;;  %3974 = vmatpush2.bf16.msra.mxu0 %v5344_v9  ;;  %v2205_v56 = vmax.f32 %v2187_v51, 0.0  ;;  %v5413_v8 = vld [vmem:[#allocation4 + $0x3a8] ss:$16 sps:$4 sm:$0xff]   ;;  %v5421_v10 = vld [vmem:[#allocation4 + $0x38c] ss:$16 sps:$4 sm:$0xff]  }
 0x283   :  { %3975 = vmatprep.subr.bf16.mxu0 %v5352_v11  ;;  %v5416_v9 = vld [vmem:[#allocation4 + $0x5a8] ss:$16 sps:$4 sm:$0xff]   ;;  %v5424_v11 = vld [vmem:[#allocation4 + $0x58c] ss:$16 sps:$4 sm:$0xff]  }
 0x284   :  { %v2206_v20 = vmax.f32 %v2189_v15, 0.0  ;;  %v5789_v26 = vpack.c.bf16 %v2205_v56, %v2197_v21  ;;  %v5419_v12 = vld [vmem:[#allocation4 + $0x388] ss:$16 sps:$4 sm:$0xff]   ;;  %v5427_v0 = vld [vmem:[#allocation4 + $0x36c] ss:$16 sps:$4 sm:$0xff]  }
 0x285   :  { %v5422_v51 = vld [vmem:[#allocation4 + $0x588] ss:$16 sps:$4 sm:$0xff]   ;;  %v5430_v13 = vld [vmem:[#allocation4 + $0x56c] ss:$16 sps:$4 sm:$0xff]  }
 0x286   :  { %v5787_v23 = vpack.c.bf16 %v2206_v20, %v2198_v3  ;;  %3976 = vmatpush2.bf16.msra.mxu0 %v5350_v16  ;;  %v5425_v14 = vld [vmem:[#allocation4 + $0x368] ss:$16 sps:$4 sm:$0xff]   ;;  %v5433_v16 = vld [vmem:[#allocation4 + $0x34c] ss:$16 sps:$4 sm:$0xff]  }
 0x287   :  { %4031 = vmatprep.subr.bf16.mxu0 %v5358_v17  ;;  %v5428_v15 = vld [vmem:[#allocation4 + $0x568] ss:$16 sps:$4 sm:$0xff]   ;;  %v5436_v56 = vld [vmem:[#allocation4 + $0x54c] ss:$16 sps:$4 sm:$0xff]  }
 0x288   :  { %3934 = vmatprep.mubr.bf16.mxu1 %v5787_v23  ;;  %v5431_v17 = vld [vmem:[#allocation4 + $0x348] ss:$16 sps:$4 sm:$0xff]   ;;  %v5439_v20 = vld [vmem:[#allocation4 + $0x32c] ss:$16 sps:$4 sm:$0xff]  }
 0x289   :  { %3978 = vmatmul.mubr.bf16.vlgmr.msra.gmra.mxu0 %v5759_v19  ;;  %3935 = vmatmul.mubr.bf16.vlgmr.msra.gmra.mxu1 %v5789_v26  ;;  %v5373_v19 = vld [vmem:[#allocation4 + $0x28c] ss:$16 sps:$4 sm:$0xff]   ;;  %v5434_v3 = vld [vmem:[#allocation4 + $0x548] ss:$16 sps:$4 sm:$0xff]  }
 0x28a   :  { %3989 = vmatpush1.bf16.msra.mxu1 %v5353_v24  ;;  %4032 = vmatpush1.bf16.msra.mxu0 %v5356_v25  ;;  %v5442_v21 = vld [vmem:[#allocation4 + $0x52c] ss:$16 sps:$4 sm:$0xff]   ;;  %v5437_v24 = vld [vmem:[#allocation4 + $0x328] ss:$16 sps:$4 sm:$0xff]  }
 0x28b   :  { %4063 = vmatprep.mubr.bf16.mxu0 %v5776_v57  ;;  %4020 = vmatprep.mubr.bf16.mxu1 %v5766_v54  ;;  %v5379_v57 = vld [vmem:[#allocation4 + $0x26c] ss:$16 sps:$4 sm:$0xff]   ;;  %v5440_v25 = vld [vmem:[#allocation4 + $0x528] ss:$16 sps:$4 sm:$0xff]  }
 0x28c   :  { %3990 = vmatprep.subr.bf16.mxu1 %v5361_v32  ;;  %4033 = vmatprep.subr.bf16.mxu0 %v5364_v33  ;;  %v5382_v54 = vld [vmem:[#allocation4 + $0x46c] ss:$16 sps:$4 sm:$0xff]  }
 0x28d   :  { %v5445_v32 = vld [vmem:[#allocation4 + $0x30c] ss:$16 sps:$4 sm:$0xff]  }
 0x28e   :  { %3991 = vmatpush1.bf16.msra.mxu1 %v5359_v34  ;;  %4034 = vmatpush1.bf16.msra.mxu0 %v5362_v35  ;;  %v5448_v33 = vld [vmem:[#allocation4 + $0x50c] ss:$16 sps:$4 sm:$0xff]   ;;  %v5443_v34 = vld [vmem:[#allocation4 + $0x308] ss:$16 sps:$4 sm:$0xff]  }
 0x28f   :  { %3992 = vmatprep.subr.bf16.mxu1 %v5367_v36  ;;  %4035 = vmatprep.subr.bf16.mxu0 %v5370_v37  ;;  %v5446_v35 = vld [vmem:[#allocation4 + $0x508] ss:$16 sps:$4 sm:$0xff]   ;;  %v5451_v36 = vld [vmem:[#allocation4 + $0x6ec] ss:$16 sps:$4 sm:$0xff]  }
 0x290   :  { %v5497_v37 = vld [vmem:[%s5919_s7 + $0x78] sm:$0xff]  }
 0x292   :  { %3993 = vmatpush1.bf16.msra.mxu1 %v5365_v38  ;;  %4036 = vmatpush1.bf16.msra.mxu0 %v5368_v18  ;;  %v5449_v38 = vld [vmem:[#allocation4 + $0x6e8] ss:$16 sps:$4 sm:$0xff]   ;;  %v5454_v18 = vld [vmem:[#allocation4 + $0x6cc] ss:$16 sps:$4 sm:$0xff]  }
 0x293   :  { %3994 = vmatprep.subr.bf16.mxu1 %v5373_v19  ;;  %4037 = vmatprep.subr.bf16.mxu0 %v5376_v39  ;;  %v5498_v19 = vld [vmem:[%s5919_s7 + $0x38] sm:$0xff]   ;;  %v5499_v39 = vld [vmem:[%s5919_s7 + $0x70] sm:$0xff]  }
 0x296   :  { %3995 = vmatpush1.bf16.msra.mxu1 %v5371_v40  ;;  %4038 = vmatpush1.bf16.msra.mxu0 %v5374_v41  ;;  %v5452_v40 = vld [vmem:[#allocation4 + $0x6c8] ss:$16 sps:$4 sm:$0xff]   ;;  %v5457_v41 = vld [vmem:[#allocation4 + $0x6ac] ss:$16 sps:$4 sm:$0xff]  }
 0x297   :  { %3996 = vmatprep.subr.bf16.mxu1 %v5379_v57  ;;  %4039 = vmatprep.subr.bf16.mxu0 %v5382_v54  ;;  %v5500_v57 = vld [vmem:[%s5919_s7 + $0x30] sm:$0xff]   ;;  %v5501_v54 = vld [vmem:[%s5919_s7 + $0x68] sm:$0xff]  }
 0x29a   :  { %3997 = vmatpush1.bf16.msra.mxu1 %v5377_v42  ;;  %4040 = vmatpush1.bf16.msra.mxu0 %v5380_v43  ;;  %v5503_v42 = vld [vmem:[%s5919_s7 + $0x60] sm:$0xff]   ;;  %v5458_v43 = vld [vmem:[#allocation4 + $0x688] ss:$16 sps:$4 sm:$0xff]  }
 0x29b   :  { %3998 = vmatprep.subr.bf16.mxu1 %v5385_v44  ;;  %4041 = vmatprep.subr.bf16.mxu0 %v5388_v45  ;;  %v5463_v44 = vld [vmem:[#allocation4 + $0x66c] ss:$16 sps:$4 sm:$0xff]   ;;  %v5504_v45 = vld [vmem:[%s5919_s7 + $0x20] sm:$0xff]  }
 0x29e   :  { %3999 = vmatpush1.bf16.msra.mxu1 %v5383_v46  ;;  %4042 = vmatpush1.bf16.msra.mxu0 %v5386_v47  ;;  %v5505_v46 = vld [vmem:[%s5919_s7 + $0x58] sm:$0xff]  }
 0x29f   :  { %4000 = vmatprep.subr.bf16.mxu1 %v5391_v48  ;;  %4043 = vmatprep.subr.bf16.mxu0 %v5394_v49  ;;  %v5461_v47 = vld [vmem:[#allocation4 + $0x668] ss:$16 sps:$4 sm:$0xff]   ;;  %v5466_v48 = vld [vmem:[#allocation4 + $0x64c] ss:$16 sps:$4 sm:$0xff]  }
 0x2a0   :  { %v5506_v49 = vld [vmem:[%s5919_s7 + $0x18] sm:$0xff]  }
 0x2a2   :  { %4001 = vmatpush1.bf16.msra.mxu1 %v5389_v50  ;;  %4044 = vmatpush1.bf16.msra.mxu0 %v5392_v52  ;;  %v5507_v50 = vld [vmem:[%s5919_s7 + $0x50] sm:$0xff]   ;;  %v5464_v52 = vld [vmem:[#allocation4 + $0x648] ss:$16 sps:$4 sm:$0xff]  }
 0x2a3   :  { %4002 = vmatprep.subr.bf16.mxu1 %v5397_v53  ;;  %4045 = vmatprep.subr.bf16.mxu0 %v5400_v55  ;;  %v5469_v53 = vld [vmem:[#allocation4 + $0x62c] ss:$16 sps:$4 sm:$0xff]   ;;  %v5508_v55 = vld [vmem:[%s5919_s7 + $0x10] sm:$0xff]  }
 0x2a6   :  { %4003 = vmatpush1.bf16.msra.mxu1 %v5395_v58  ;;  %4046 = vmatpush1.bf16.msra.mxu0 %v5398_v60  ;;  %v5509_v58 = vld [vmem:[%s5919_s7 + $0x48] sm:$0xff]  }
 0x2a7   :  { %4004 = vmatprep.subr.bf16.mxu1 %v5403_v61  ;;  %4047 = vmatprep.subr.bf16.mxu0 %v5406_v62  ;;  %v5467_v60 = vld [vmem:[#allocation4 + $0x628] ss:$16 sps:$4 sm:$0xff]   ;;  %v5472_v61 = vld [vmem:[#allocation4 + $0x60c] ss:$16 sps:$4 sm:$0xff]  }
 0x2a8   :  { %v5510_v62 = vld [vmem:[%s5919_s7 + $0x8] sm:$0xff]  }
 0x2aa   :  { %4005 = vmatpush2.bf16.msra.mxu1 %v5401_v1  ;;  %4048 = vmatpush2.bf16.msra.mxu0 %v5404_v63  ;;  %v5511_v1 = vld [vmem:[%s5919_s7 + $0x40] sm:$0xff]   ;;  %v5470_v63 = vld [vmem:[#allocation4 + $0x608] ss:$16 sps:$4 sm:$0xff]  }
 0x2ab   :  { %4006 = vmatprep.subr.bf16.mxu1 %v5409_v5  ;;  %4049 = vmatprep.subr.bf16.mxu0 %v5412_v6  ;;  %v5475_v5 = vld [vmem:[#allocation4 + $0x7ec] ss:$16 sps:$4 sm:$0xff]   ;;  %v5512_v6 = vld [vmem:[%s5919_s7] sm:$0xff]  }
 0x2ae   :  { %4007 = vmatpush2.bf16.msra.mxu1 %v5407_v4  ;;  %4050 = vmatpush2.bf16.msra.mxu0 %v5410_v2  ;;  %v5473_v4 = vld [vmem:[#allocation4 + $0x7e8] ss:$16 sps:$4 sm:$0xff]   ;;  %v5478_v2 = vld [vmem:[#allocation4 + $0x7cc] ss:$16 sps:$4 sm:$0xff]  }
 0x2af   :  { %4008 = vmatprep.subr.bf16.mxu1 %v5415_v7  ;;  %4051 = vmatprep.subr.bf16.mxu0 %v5418_v27  ;;  %v5476_v7 = vld [vmem:[#allocation4 + $0x7c8] ss:$16 sps:$4 sm:$0xff]   ;;  %v5481_v27 = vld [vmem:[#allocation4 + $0x7ac] ss:$16 sps:$4 sm:$0xff]  }
 0x2b2   :  { %4009 = vmatpush2.bf16.msra.mxu1 %v5413_v8  ;;  %4052 = vmatpush2.bf16.msra.mxu0 %v5416_v9  ;;  %v5479_v8 = vld [vmem:[#allocation4 + $0x7a8] ss:$16 sps:$4 sm:$0xff]   ;;  %v5484_v9 = vld [vmem:[#allocation4 + $0x78c] ss:$16 sps:$4 sm:$0xff]  }
 0x2b3   :  { %4010 = vmatprep.subr.bf16.mxu1 %v5421_v10  ;;  %4053 = vmatprep.subr.bf16.mxu0 %v5424_v11  ;;  %v5482_v10 = vld [vmem:[#allocation4 + $0x788] ss:$16 sps:$4 sm:$0xff]   ;;  %v5487_v11 = vld [vmem:[#allocation4 + $0x76c] ss:$16 sps:$4 sm:$0xff]  }
 0x2b6   :  { %4011 = vmatpush2.bf16.msra.mxu1 %v5419_v12  ;;  %4054 = vmatpush2.bf16.msra.mxu0 %v5422_v51  ;;  %v5485_v12 = vld [vmem:[#allocation4 + $0x768] ss:$16 sps:$4 sm:$0xff]   ;;  %v5490_v51 = vld [vmem:[#allocation4 + $0x74c] ss:$16 sps:$4 sm:$0xff]  }
 0x2b7   :  { %4012 = vmatprep.subr.bf16.mxu1 %v5427_v0  ;;  %4055 = vmatprep.subr.bf16.mxu0 %v5430_v13  ;;  %v5488_v0 = vld [vmem:[#allocation4 + $0x748] ss:$16 sps:$4 sm:$0xff]   ;;  %v5493_v13 = vld [vmem:[#allocation4 + $0x72c] ss:$16 sps:$4 sm:$0xff]  }
 0x2ba   :  { %4013 = vmatpush2.bf16.msra.mxu1 %v5425_v14  ;;  %4056 = vmatpush2.bf16.msra.mxu0 %v5428_v15  ;;  %v5491_v14 = vld [vmem:[#allocation4 + $0x728] ss:$16 sps:$4 sm:$0xff]   ;;  %v5496_v15 = vld [vmem:[#allocation4 + $0x70c] ss:$16 sps:$4 sm:$0xff]  }
 0x2bb   :  { %4014 = vmatprep.subr.bf16.mxu1 %v5433_v16  ;;  %4057 = vmatprep.subr.bf16.mxu0 %v5436_v56  ;;  %v5494_v16 = vld [vmem:[#allocation4 + $0x708] ss:$16 sps:$4 sm:$0xff]  }
 0x2bc   :  { %v5513_v56 = vld [vmem:[%s5919_s7 + $0xf8] sm:$0xff]  }
 0x2be   :  { %4015 = vmatpush2.bf16.msra.mxu1 %v5431_v17  ;;  %4058 = vmatpush2.bf16.msra.mxu0 %v5434_v3  ;;  %v5514_v17 = vld [vmem:[%s5919_s7 + $0xb8] sm:$0xff]   ;;  %v5515_v3 = vld [vmem:[%s5919_s7 + $0xf0] sm:$0xff]  }
 0x2bf   :  { %4016 = vmatprep.subr.bf16.mxu1 %v5439_v20  ;;  %4059 = vmatprep.subr.bf16.mxu0 %v5442_v21  ;;  %v5516_v20 = vld [vmem:[%s5919_s7 + $0xb0] sm:$0xff]   ;;  %v5518_v21 = vld [vmem:[%s5919_s7 + $0xa8] sm:$0xff]  }
 0x2c2   :  { %4017 = vmatpush2.bf16.msra.mxu1 %v5437_v24  ;;  %4060 = vmatpush2.bf16.msra.mxu0 %v5440_v25  ;;  %v5519_v24 = vld [vmem:[%s5919_s7 + $0xe0] sm:$0xff]  }
 0x2c3   :  { %4018 = vmatprep.subr.bf16.mxu1 %v5445_v32  ;;  %4061 = vmatprep.subr.bf16.mxu0 %v5448_v33  ;;  %v5520_v25 = vld [vmem:[%s5919_s7 + $0xa0] sm:$0xff]   ;;  %v5521_v32 = vld [vmem:[%s5919_s7 + $0xd8] sm:$0xff]  }
 0x2c4   :  { %v5522_v33 = vld [vmem:[%s5919_s7 + $0x98] sm:$0xff]  }
 0x2c6   :  { %4019 = vmatpush2.bf16.msra.mxu1 %v5443_v34  ;;  %4062 = vmatpush2.bf16.msra.mxu0 %v5446_v35  ;;  %v3807_v34 = vpop.f32.mrf.mxu0 }
 0x2c7   :  { %4074 = vmatprep.subr.bf16.mxu1 %v5451_v36  ;;  %5044 = vmatprep.subr.bf16.mxu0 %v5497_v37 }
 0x2c8   :  { %v3809_v35 = vpop.f32.mrf.mxu0 }
 0x2c9   :  { %4021 = vmatmul.mubr.bf16.vlgmr.msra.gmra.mxu1 %v5768_v59  ;;  %4064 = vmatmul.mubr.bf16.vlgmr.msra.gmra.mxu0 %v5778_v22  ;;  %v5455_v59 = vld [vmem:[#allocation4 + $0x6a8] ss:$16 sps:$4 sm:$0xff]   ;;  %v5460_v22 = vld [vmem:[#allocation4 + $0x68c] ss:$16 sps:$4 sm:$0xff]   ;;  %v3850_v37 = vpop.f32.mrf.mxu1 }
 0x2ca   :  { %4075 = vmatpush1.bf16.msra.mxu1 %v5449_v38  ;;  %4106 = vmatprep.mubr.bf16.mxu1 %v5787_v23  ;;  %v5502_v23 = vld [vmem:[%s5919_s7 + $0x28] sm:$0xff]   ;;  %v3811_v36 = vpop.f32.mrf.mxu0 }
 0x2cb   :  { %4076 = vmatprep.subr.bf16.mxu1 %v5454_v18  ;;  %5045 = vmatpush3.bf16.msra.mxu0 %v5498_v19  ;;  %v3852_v18 = vpop.f32.mrf.mxu1 }
 0x2cc   :  { %5046 = vmatprep.subr.bf16.mxu0 %v5499_v39  ;;  %v3813_v38 = vpop.f32.mrf.mxu0  ;;  %v2471_v39 = vld [vmem:[%s5918_s6] sm:$0xf] }
 0x2ce   :  { %4077 = vmatpush1.bf16.msra.mxu1 %v5452_v40  ;;  %v3854_v40 = vpop.f32.mrf.mxu1 }
 0x2cf   :  { %4078 = vmatprep.subr.bf16.mxu1 %v5457_v41  ;;  %5047 = vmatpush3.bf16.msra.mxu0 %v5500_v57  ;;  %v2480_v57 = vrot.slane %v2471_v39, %v5693_v28  ;;  %v5524_v28 = vld [vmem:[%s5919_s7 + $0x90] sm:$0xff]  }
 0x2d0   :  { %5048 = vmatprep.subr.bf16.mxu0 %v5501_v54  ;;  %v2476_v54 = vrot.slane %v2471_v39, %v5699_v30 }
 0x2d2   :  { %4079 = vmatpush1.bf16.msra.mxu1 %v5455_v59  ;;  %v3856_v59 = vpop.f32.mrf.mxu1 }
 0x2d3   :  { %4080 = vmatprep.subr.bf16.mxu1 %v5460_v22  ;;  %5049 = vmatpush3.bf16.msra.mxu0 %v5502_v23  ;;  %v3810_v23 = vadd.f32 %v3809_v35, %v2480_v57 }
 0x2d4   :  { %5050 = vmatprep.subr.bf16.mxu0 %v5503_v42  ;;  %v3812_v42 = vadd.f32 %v3811_v36, %v2476_v54 }
 0x2d6   :  { %4081 = vmatpush1.bf16.msra.mxu1 %v5458_v43  ;;  %v3808_v43 = vadd.f32 %v3807_v34, %v2476_v54 }
 0x2d7   :  { %4082 = vmatprep.subr.bf16.mxu1 %v5463_v44  ;;  %5051 = vmatpush3.bf16.msra.mxu0 %v5504_v45  ;;  %v3814_v45 = vadd.f32 %v3813_v38, %v2480_v57 }
 0x2d8   :  { %5052 = vmatprep.subr.bf16.mxu0 %v5505_v46  ;;  %v3853_v46 = vadd.f32 %v3852_v18, %v3810_v23 }
 0x2d9   :  { %v3857_v30 = vadd.f32 %v3856_v59, %v3814_v45 }
 0x2da   :  { %4083 = vmatpush1.bf16.msra.mxu1 %v5461_v47  ;;  %v3855_v47 = vadd.f32 %v3854_v40, %v3812_v42 }
 0x2db   :  { %4084 = vmatprep.subr.bf16.mxu1 %v5466_v48  ;;  %5053 = vmatpush3.bf16.msra.mxu0 %v5506_v49  ;;  %v5523_v48 = vld [vmem:[%s5919_s7 + $0xd0] sm:$0xff]   ;;  %v3851_v49 = vadd.f32 %v3850_v37, %v3808_v43 }
 0x2dc   :  { %5054 = vmatprep.subr.bf16.mxu0 %v5507_v50 }
 0x2de   :  { %4085 = vmatpush1.bf16.msra.mxu1 %v5464_v52 }
 0x2df   :  { %4086 = vmatprep.subr.bf16.mxu1 %v5469_v53  ;;  %5055 = vmatpush3.bf16.msra.mxu0 %v5508_v55 }
 0x2e0   :  { %5056 = vmatprep.subr.bf16.mxu0 %v5509_v58 }
 0x2e2   :  { %4087 = vmatpush1.bf16.msra.mxu1 %v5467_v60 }
 0x2e3   :  { %4088 = vmatprep.subr.bf16.mxu1 %v5472_v61  ;;  %5057 = vmatpush3.bf16.msra.mxu0 %v5510_v62 }
 0x2e4   :  { %5058 = vmatprep.subr.bf16.mxu0 %v5511_v1 }
 0x2e6   :  { %4089 = vmatpush1.bf16.msra.mxu1 %v5470_v63  ;;  %v5525_v63 = vld [vmem:[%s5919_s7 + $0xc8] sm:$0xff]  }
 0x2e7   :  { %4090 = vmatprep.subr.bf16.mxu1 %v5475_v5  ;;  %5059 = vmatpush3.bf16.msra.mxu0 %v5512_v6 }
 0x2ea   :  { %4091 = vmatpush2.bf16.msra.mxu1 %v5473_v4  ;;  %v5526_v4 = vld [vmem:[%s5919_s7 + $0x88] sm:$0xff]  }
 0x2eb   :  { %4092 = vmatprep.subr.bf16.mxu1 %v5478_v2 }
 0x2ee   :  { %4093 = vmatpush2.bf16.msra.mxu1 %v5476_v7 }
 0x2ef   :  { %4094 = vmatprep.subr.bf16.mxu1 %v5481_v27 }
 0x2f2   :  { %4095 = vmatpush2.bf16.msra.mxu1 %v5479_v8 }
 0x2f3   :  { %4096 = vmatprep.subr.bf16.mxu1 %v5484_v9  ;;  %v5527_v9 = vld [vmem:[%s5919_s7 + $0xc0] sm:$0xff]  }
 0x2f6   :  { %4097 = vmatpush2.bf16.msra.mxu1 %v5482_v10 }
 0x2f7   :  { %4098 = vmatprep.subr.bf16.mxu1 %v5487_v11  ;;  %v5528_v11 = vld [vmem:[%s5919_s7 + $0x80] sm:$0xff]  }
 0x2fa   :  { %4099 = vmatpush2.bf16.msra.mxu1 %v5485_v12 }
 0x2fb   :  { %4100 = vmatprep.subr.bf16.mxu1 %v5490_v51 }
 0x2fe   :  { %4101 = vmatpush2.bf16.msra.mxu1 %v5488_v0 }
 0x2ff   :  { %4102 = vmatprep.subr.bf16.mxu1 %v5493_v13 }
 0x302   :  { %4103 = vmatpush2.bf16.msra.mxu1 %v5491_v14 }
 0x303   :  { %4104 = vmatprep.subr.bf16.mxu1 %v5496_v15 }
 0x306   :  { %4105 = vmatpush2.bf16.msra.mxu1 %v5494_v16 }
 0x307   :  { %5066 = vmatprep.subr.bf16.mxu1 %v5513_v56 }
 0x309   :  { %4107 = vmatmul.mubr.bf16.vlgmr.msra.gmra.mxu1 %v5789_v26  ;;  %v5517_v26 = vld [vmem:[%s5919_s7 + $0xe8] sm:$0xff]   ;;  %v3893_v19 = vpop.f32.mrf.mxu0 }
 0x30a   :  { %5067 = vmatpush3.bf16.msra.mxu1 %v5514_v17  ;;  %v3894_v58 = vadd.f32 %v3893_v19, %v3851_v49 }
 0x30b   :  { %5068 = vmatprep.subr.bf16.mxu1 %v5515_v3  ;;  %v3895_v41 = vpop.f32.mrf.mxu0  ;;  %v2488_v3 = vrot.slane %v2471_v39, %v5696_v29 }
 0x30c   :  { %v3896_v53 = vadd.f32 %v3895_v41, %v3853_v46 }
 0x30d   :  { %v3897_v22 = vpop.f32.mrf.mxu0 }
 0x30e   :  { %5069 = vmatpush3.bf16.msra.mxu1 %v5516_v20  ;;  %v3898_v55 = vadd.f32 %v3897_v22, %v3855_v47  ;;  %v2484_v20 = vrot.slane %v2471_v39, %v5702_v31 }
 0x30f   :  { %5070 = vmatprep.subr.bf16.mxu1 %v5517_v26  ;;  %v3899_v50 = vpop.f32.mrf.mxu0 }
 0x310   :  { %v3900_v61 = vadd.f32 %v3899_v50, %v3857_v30 }
 0x312   :  { %5071 = vmatpush3.bf16.msra.mxu1 %v5518_v21 }
 0x313   :  { %5072 = vmatprep.subr.bf16.mxu1 %v5519_v24 }
 0x316   :  { %5073 = vmatpush3.bf16.msra.mxu1 %v5520_v25 }
 0x317   :  { %5074 = vmatprep.subr.bf16.mxu1 %v5521_v32 }
 0x31a   :  { %5075 = vmatpush3.bf16.msra.mxu1 %v5522_v33 }
 0x31b   :  { %5076 = vmatprep.subr.bf16.mxu1 %v5523_v48 }
 0x31e   :  { %5077 = vmatpush3.bf16.msra.mxu1 %v5524_v28 }
 0x31f   :  { %5078 = vmatprep.subr.bf16.mxu1 %v5525_v63 }
 0x322   :  { %5079 = vmatpush3.bf16.msra.mxu1 %v5526_v4 }
 0x323   :  { %5080 = vmatprep.subr.bf16.mxu1 %v5527_v9 }
 0x326   :  { %5081 = vmatpush3.bf16.msra.mxu1 %v5528_v11 }
 0x349   :  { %v3936_v44 = vpop.f32.mrf.mxu1  ;;  %v3979_v0 = vpop.f32.mrf.mxu0 }
 0x34a   :  { %v3937_v5 = vadd.f32 %v3936_v44, %v3894_v58  ;;  %v3980_v32 = vadd.f32 %v3979_v0, %v2484_v20 }
 0x34b   :  { %v3938_v52 = vpop.f32.mrf.mxu1  ;;  %v3981_v13 = vpop.f32.mrf.mxu0 }
 0x34c   :  { %v3939_v62 = vadd.f32 %v3938_v52, %v3896_v53  ;;  %v4117_v10 = vmax.f32 %v3937_v5, 0.0  ;;  %v3982_v24 = vadd.f32 %v3981_v13, %v2488_v3  ;;  %v5011_v53 = vld [vmem:[%s5920_s8] ss:$0 sm:$0xff] }
 0x34d   :  { %v3940_v60 = vpop.f32.mrf.mxu1  ;;  %v3983_v14 = vpop.f32.mrf.mxu0 }
 0x34e   :  { %v3941_v1 = vadd.f32 %v3940_v60, %v3898_v55  ;;  %v4118_v27 = vmax.f32 %v3939_v62, 0.0  ;;  %v3984_v25 = vadd.f32 %v3983_v14, %v2484_v20 }
 0x34f   :  { %v3942_v6 = vpop.f32.mrf.mxu1  ;;  %v3985_v16 = vpop.f32.mrf.mxu0 }
 0x350   :  { %v3943_v2 = vadd.f32 %v3942_v6, %v3900_v61  ;;  %v4121_v7 = vmax.f32 %v3941_v1, 0.0  ;;  %v3986_v34 = vadd.f32 %v3985_v16, %v2488_v3 }
 0x352   :  { %v4122_v8 = vmax.f32 %v3943_v2, 0.0  ;;  %v4125_v51 = vpack.c.bf16 %v4121_v7, %v4117_v10 }
 0x354   :  { %v4126_v12 = vpack.c.bf16 %v4122_v8, %v4118_v27 }
 0x356   :  { %4424 = vmatprep.mubr.bf16.mxu0 %v4126_v12 }
 0x357   :  { %4425 = vmatmul.mubr.bf16.vlgmr.msra.gmra.mxu0 %v4125_v51 }
 0x389   :  { %v4022_v15 = vpop.f32.mrf.mxu1  ;;  %v4065_v17 = vpop.f32.mrf.mxu0 }
 0x38a   :  { %v4023_v37 = vadd.f32 %v4022_v15, %v3980_v32 }
 0x38b   :  { %v4024_v56 = vpop.f32.mrf.mxu1  ;;  %v4067_v21 = vpop.f32.mrf.mxu0 }
 0x38c   :  { %v4025_v35 = vadd.f32 %v4024_v56, %v3982_v24  ;;  %v4066_v54 = vadd.f32 %v4065_v17, %v4023_v37 }
 0x38d   :  { %v4026_v26 = vpop.f32.mrf.mxu1  ;;  %v4069_v38 = vpop.f32.mrf.mxu0 }
 0x38e   :  { %v4027_v36 = vadd.f32 %v4026_v26, %v3984_v25  ;;  %v4068_v41 = vadd.f32 %v4067_v21, %v4025_v35 }
 0x38f   :  { %v4028_v33 = vpop.f32.mrf.mxu1  ;;  %v4071_v29 = vpop.f32.mrf.mxu0 }
 0x390   :  { %v4029_v19 = vadd.f32 %v4028_v33, %v3986_v34  ;;  %v4070_v57 = vadd.f32 %v4069_v38, %v4027_v36 }
 0x392   :  { %v4072_v31 = vadd.f32 %v4071_v29, %v4029_v19 }
 0x3c9   :  { %v4108_v18 = vpop.f32.mrf.mxu1 }
 0x3ca   :  { %v4109_v23 = vadd.f32 %v4108_v18, %v4066_v54 }
 0x3cb   :  { %v4110_v40 = vpop.f32.mrf.mxu1 }
 0x3cc   :  { %v4111_v39 = vadd.f32 %v4110_v40, %v4068_v41  ;;  %v4119_v47 = vmax.f32 %v4109_v23, 0.0 }
 0x3cd   :  { %v4112_v59 = vpop.f32.mrf.mxu1 }
 0x3ce   :  { %v4113_v22 = vadd.f32 %v4112_v59, %v4070_v57  ;;  %v4120_v45 = vmax.f32 %v4111_v39, 0.0 }
 0x3cf   :  { %v4114_v42 = vpop.f32.mrf.mxu1 }
 0x3d0   :  { %v4115_v43 = vadd.f32 %v4114_v42, %v4072_v31  ;;  %v4123_v44 = vmax.f32 %v4113_v22, 0.0 }
 0x3d2   :  { %v4124_v46 = vmax.f32 %v4115_v43, 0.0  ;;  %v4127_v49 = vpack.c.bf16 %v4123_v44, %v4119_v47 }
 0x3d4   :  { %v4128_v48 = vpack.c.bf16 %v4124_v46, %v4120_v45 }
 0x3d6   :  { %4465 = vmatprep.mubr.bf16.mxu1 %v4128_v48 }
 0x3d7   :  { %4466 = vmatmul.mubr.bf16.vlgmr.msra.gmra.mxu1 %v4127_v49 }
 0x417   :  { %v5060_v50 = vpop.f32.mrf.mxu0 }
 0x419   :  { %v5061_v52 = vpop.f32.mrf.mxu0 }
 0x41a   :  { %v5062_v30 = vadd.f32 %v5061_v52, %v5060_v50 }
 0x41b   :  { %v5063_v28 = vpop.f32.mrf.mxu0 }
 0x41c   :  { %v4427_v61 = vadd.f32 %v5062_v30, %v5011_v53 }
 0x41d   :  { %v5064_v55 = vpop.f32.mrf.mxu0 }
 0x41e   :  { %v5065_v62 = vadd.f32 %v5064_v55, %v5063_v28 }
 0x420   :  { %v4430_v4 = vadd.f32 %v5065_v62, %v5011_v53 }
 0x497   :  { %v5082_v58 = vpop.f32.mrf.mxu1 }
 0x499   :  { %v5083_v60 = vpop.f32.mrf.mxu1 }
 0x49a   :  { %v5084_v1 = vadd.f32 %v5083_v60, %v5082_v58 }
 0x49b   :  { %v5085_v63 = vpop.f32.mrf.mxu1 }
 0x49c   :  { %v4468_v5 = vadd.f32 %v5084_v1, %v4427_v61 }
 0x49d   :  { %v5086_v6 = vpop.f32.mrf.mxu1 }
 0x49e   :  { %4475 = vst.msk [vmem:[%s5921_s9] sm:$0xff] %vm4474_vm2, %v4468_v5  ;;  %v5087_v2 = vadd.f32 %v5086_v6, %v5085_v63 }
 0x4a0   :  { %v4471_v7 = vadd.f32 %v5087_v2, %v4430_v4 }
 0x4a2   :  { %4476 = vst.msk [vmem:[%s5921_s9 + $0x8] sm:$0xff] %vm4474_vm2, %v4471_v7 }
 0x4a3   :  { %4481 = vsyncpa [#allocation3], 1 }
 0x4a4   :  { %4482 = vsyncpa [#allocation5], 1 }

</bundles_post_ra>
